<compile_context>
chip_gen: v7x
topology: tpu7x:2x2x1
jax: 0.10.0
libtpu: 0.0.40
codegen_flags: <defaults>
</compile_context>

<pallas_src>
import math

import jax
import jax.numpy as jnp
from jax.experimental import pallas as pl
from jax.experimental.pallas import tpu as pltpu

# ---- small, TPU-friendly GPT config (params_given path of GPT.__init__) ----
B, T = 2, 8              # batch, sequence length
C = 128                  # n_embd
N_HEAD = 4               # n_head
N_LAYER = 2              # n_layer
VOCAB = 256              # vocab_size
BLOCK_SIZE = 16          # block_size (T <= block_size)
HEAD_DIM = C // N_HEAD


def _layernorm(x, w, b, eps=1e-5):
    mu = jnp.mean(x, axis=-1, keepdims=True)
    var = jnp.mean((x - mu) ** 2, axis=-1, keepdims=True)
    return (x - mu) * jax.lax.rsqrt(var + eps) * w + b


# ----------------------------------------------------------------------------
# Fully fused GPT kernel:
#   grid = (B, N_LAYER); residual stream x lives in a VMEM scratch across the
#   layer axis; per-layer (stacked) weights are selected by the layer grid index;
#   final ln_f + lm_head run at the last layer step and write the logits block.
# ----------------------------------------------------------------------------
def gpt_fused_kernel(x_ref, lnfw_ref, lnfb_ref, wlm_ref,
                     ln1w_ref, ln1b_ref, wqkv_ref, bqkv_ref,
                     wpr_ref, bpr_ref, ln2w_ref, ln2b_ref,
                     wfc_ref, bfc_ref, wfp_ref, bfp_ref,
                     logits_ref, x_sc):
    layer = pl.program_id(1)

    # Initialize the resident residual stream for this batch block.
    @pl.when(layer == 0)
    def _():
        x_sc[...] = x_ref[...].astype(jnp.float32)

    x = x_sc[0]                                              # (T, C) f32

    # ---- ln_1 + causal self-attention (head-batched) ----
    h = _layernorm(x, ln1w_ref[...], ln1b_ref[...])          # (T, C) f32
    qkv = jnp.dot(h.astype(jnp.bfloat16), wqkv_ref[...],
                  preferred_element_type=jnp.float32) + bqkv_ref[...]   # (T, 3C)
    # Lane-aligned 128-wide slices, then split into heads.
    q = qkv[:, :C].reshape(T, N_HEAD, HEAD_DIM)
    k = qkv[:, C:2 * C].reshape(T, N_HEAD, HEAD_DIM)
    v = qkv[:, 2 * C:].reshape(T, N_HEAD, HEAD_DIM)

    scale = 1.0 / math.sqrt(HEAD_DIM)
    row = jax.lax.broadcasted_iota(jnp.int32, (T, T), 0)
    col = jax.lax.broadcasted_iota(jnp.int32, (T, T), 1)
    causal = (col <= row)[None]                              # (1, T, T)

    att = jnp.einsum('thd,shd->hts', q, k,
                     preferred_element_type=jnp.float32) * scale        # (H, T, T)
    att = jnp.where(causal, att, -1e30)                      # finite mask (NaN-safe)
    att = att - jnp.max(att, axis=-1, keepdims=True)
    p = jnp.exp(att)
    p = p * pl.reciprocal(jnp.sum(p, axis=-1, keepdims=True), approx=True)
    y = jnp.einsum('hts,shd->thd', p, v,
                   preferred_element_type=jnp.float32).reshape(T, C)
    y = jnp.dot(y.astype(jnp.bfloat16), wpr_ref[...],
                preferred_element_type=jnp.float32) + bpr_ref[...]
    x = x + y

    # ---- ln_2 + MLP with NewGELU (tanh approximation) ----
    h = _layernorm(x, ln2w_ref[...], ln2b_ref[...])
    h = jnp.dot(h.astype(jnp.bfloat16), wfc_ref[...],
                preferred_element_type=jnp.float32) + bfc_ref[...]
    h = 0.5 * h * (1.0 + jnp.tanh(math.sqrt(2.0 / math.pi) *
                                  (h + 0.044715 * h * h * h)))
    h = jnp.dot(h.astype(jnp.bfloat16), wfp_ref[...],
                preferred_element_type=jnp.float32) + bfp_ref[...]
    x = x + h
    x_sc[0] = x

    # ---- final ln_f + lm_head, fused into the last layer step ----
    @pl.when(layer == N_LAYER - 1)
    def _():
        hf = _layernorm(x, lnfw_ref[...], lnfb_ref[...])
        logits = jnp.dot(hf.astype(jnp.bfloat16), wlm_ref[...],
                         preferred_element_type=jnp.float32)            # (T, VOCAB)
        logits_ref[0] = logits.astype(logits_ref.dtype)


def gpt_pallas(x_emb, p):
    args = (x_emb, p['lnf_w'], p['lnf_b'], p['w_lm'],
            p['ln1_w'], p['ln1_b'], p['w_qkv'], p['b_qkv'],
            p['w_attn_proj'], p['b_attn_proj'], p['ln2_w'], p['ln2_b'],
            p['w_fc'], p['b_fc'], p['w_mlp_proj'], p['b_mlp_proj'])

    def layer_spec(arr):
        # Stacked (N_LAYER, a, b): squeeze the layer dim, index it by the layer axis.
        return pl.BlockSpec((None,) + arr.shape[1:], lambda b, l: (l, 0, 0))

    in_specs = [
        pl.BlockSpec((1, T, C), lambda b, l: (b, 0, 0)),      # token+pos embeddings
        pl.BlockSpec((1, C), lambda b, l: (0, 0)),            # lnf_w
        pl.BlockSpec((1, C), lambda b, l: (0, 0)),            # lnf_b
        pl.BlockSpec((C, VOCAB), lambda b, l: (0, 0)),        # lm_head weight
    ] + [layer_spec(a) for a in args[4:]]

    return pl.pallas_call(
        gpt_fused_kernel,
        out_shape=jax.ShapeDtypeStruct((B, T, VOCAB), jnp.float32),
        grid=(B, N_LAYER),
        in_specs=in_specs,
        out_specs=pl.BlockSpec((1, T, VOCAB), lambda b, l: (b, 0, 0)),
        scratch_shapes=[pltpu.VMEM((1, T, C), jnp.float32)],  # resident residual stream
        compiler_params=pltpu.CompilerParams(
            dimension_semantics=("parallel", "arbitrary")),
    )(*args)


# ----------------------------------------------------------------------------
# Deterministic parameter init mirroring GPT._init_weights (weights stacked
# along a leading layer axis; matmul weights stored in bf16).
# ----------------------------------------------------------------------------
def init_params(key):
    keys = iter(jax.random.split(key, 8))
    def nrm(shape, std, dtype=jnp.float32):
        return (std * jax.random.normal(next(keys), shape)).astype(dtype)
    proj_std = 0.02 / math.sqrt(2 * N_LAYER)   # special c_proj.weight init
    return {
        'wte': nrm((VOCAB, C), 0.02),
        'wpe': nrm((BLOCK_SIZE, C), 0.02),
        'lnf_w': jnp.ones((1, C), jnp.float32),
        'lnf_b': jnp.zeros((1, C), jnp.float32),
        'w_lm': nrm((C, VOCAB), 0.02, jnp.bfloat16),          # lm_head (no bias)
        'ln1_w': jnp.ones((N_LAYER, 1, C), jnp.float32),
        'ln1_b': jnp.zeros((N_LAYER, 1, C), jnp.float32),
        'w_qkv': nrm((N_LAYER, C, 3 * C), 0.02, jnp.bfloat16),
        'b_qkv': jnp.zeros((N_LAYER, 1, 3 * C), jnp.float32),
        'w_attn_proj': nrm((N_LAYER, C, C), proj_std, jnp.bfloat16),
        'b_attn_proj': jnp.zeros((N_LAYER, 1, C), jnp.float32),
        'ln2_w': jnp.ones((N_LAYER, 1, C), jnp.float32),
        'ln2_b': jnp.zeros((N_LAYER, 1, C), jnp.float32),
        'w_fc': nrm((N_LAYER, C, 4 * C), 0.02, jnp.bfloat16),
        'b_fc': jnp.zeros((N_LAYER, 1, 4 * C), jnp.float32),
        'w_mlp_proj': nrm((N_LAYER, 4 * C, C), proj_std, jnp.bfloat16),
        'b_mlp_proj': jnp.zeros((N_LAYER, 1, C), jnp.float32),
    }


def gpt_forward(idx, params):
    # Embedding gathers are glue in plain JAX; the whole transformer stack,
    # ln_f and lm_head run in a single Pallas kernel.
    tok_emb = jnp.take(params['wte'], idx, axis=0)            # (B, T, C)
    pos_emb = params['wpe'][:T][None]                         # (1, T, C)
    x = tok_emb + pos_emb                                     # embd dropout = identity
    return gpt_pallas(x, params)


# Pure-JAX reference (same bf16 weights) for a correctness check.
def gpt_reference(idx, params):
    f32 = lambda a: a.astype(jnp.float32)
    x = jnp.take(params['wte'], idx, axis=0) + params['wpe'][:T][None]
    causal = jnp.arange(T)[None, :] <= jnp.arange(T)[:, None]
    for l in range(N_LAYER):
        h = _layernorm(x, params['ln1_w'][l], params['ln1_b'][l])
        qkv = h @ f32(params['w_qkv'][l]) + params['b_qkv'][l]
        q, k, v = jnp.split(qkv, 3, axis=-1)
        q = q.reshape(B, T, N_HEAD, HEAD_DIM)
        k = k.reshape(B, T, N_HEAD, HEAD_DIM)
        v = v.reshape(B, T, N_HEAD, HEAD_DIM)
        att = jnp.einsum('bthd,bshd->bhts', q, k) / math.sqrt(HEAD_DIM)
        att = jnp.where(causal[None, None], att, -1e30)
        att = jax.nn.softmax(att, axis=-1)
        y = jnp.einsum('bhts,bshd->bthd', att, v).reshape(B, T, C)
        x = x + (y @ f32(params['w_attn_proj'][l]) + params['b_attn_proj'][l])
        h = _layernorm(x, params['ln2_w'][l], params['ln2_b'][l])
        h = h @ f32(params['w_fc'][l]) + params['b_fc'][l]
        h = 0.5 * h * (1.0 + jnp.tanh(math.sqrt(2.0 / math.pi) *
                                      (h + 0.044715 * h ** 3)))
        x = x + (h @ f32(params['w_mlp_proj'][l]) + params['b_mlp_proj'][l])
    x = _layernorm(x, params['lnf_w'], params['lnf_b'])
    return x @ f32(params['w_lm'])


if __name__ == "__main__":
    key = jax.random.PRNGKey(0)
    pkey, ikey = jax.random.split(key)
    params = init_params(pkey)
    idx = jax.random.randint(ikey, (B, T), 0, VOCAB, dtype=jnp.int32)

    logits = jax.jit(gpt_forward)(idx, params)
    logits = jax.block_until_ready(logits)

    assert logits.shape == (B, T, VOCAB), logits.shape
    assert bool(jnp.all(jnp.isfinite(logits)))

    ref = gpt_reference(idx, params)
    max_err = float(jnp.max(jnp.abs(logits - ref)))
    assert max_err < 5e-2, f"max abs error vs reference: {max_err}"
    print("KERNEL_OK")
</pallas_src>

<mosaic_0001>
module attributes {stable_mosaic.version = 11 : i64} {
  func.func @gpt_fused_kernel(%arg0: i32, %arg1: i32, %arg2: memref<1x8x128xf32, #tpu.memory_space<vmem>>, %arg3: memref<1x128xf32, #tpu.memory_space<vmem>>, %arg4: memref<1x128xf32, #tpu.memory_space<vmem>>, %arg5: memref<128x256xbf16, #tpu.memory_space<vmem>>, %arg6: memref<1x1x128xf32, #tpu.memory_space<vmem>>, %arg7: memref<1x1x128xf32, #tpu.memory_space<vmem>>, %arg8: memref<1x128x384xbf16, #tpu.memory_space<vmem>>, %arg9: memref<1x1x384xf32, #tpu.memory_space<vmem>>, %arg10: memref<1x128x128xbf16, #tpu.memory_space<vmem>>, %arg11: memref<1x1x128xf32, #tpu.memory_space<vmem>>, %arg12: memref<1x1x128xf32, #tpu.memory_space<vmem>>, %arg13: memref<1x1x128xf32, #tpu.memory_space<vmem>>, %arg14: memref<1x128x512xbf16, #tpu.memory_space<vmem>>, %arg15: memref<1x1x512xf32, #tpu.memory_space<vmem>>, %arg16: memref<1x512x128xbf16, #tpu.memory_space<vmem>>, %arg17: memref<1x1x128xf32, #tpu.memory_space<vmem>>, %arg18: memref<1x8x256xf32, #tpu.memory_space<vmem>>, %arg19: memref<1x8x128xf32, #tpu.memory_space<vmem>>) attributes {dimension_semantics = [#tpu.dimension_semantics<parallel>, #tpu.dimension_semantics<arbitrary>], iteration_bounds = array<i64: 2, 2>, scalar_prefetch = 0 : i64, scratch_operands = 1 : i64, tpu.core_type = #tpu.core_type<tc>, window_params = [{transform_indices = @transform_0, window_bounds = array<i64: 1, 8, 128>}, {pipeline_mode = #tpu.pipeline_mode<synchronous>, transform_indices = @transform_1, window_bounds = array<i64: 1, 128>}, {pipeline_mode = #tpu.pipeline_mode<synchronous>, transform_indices = @transform_2, window_bounds = array<i64: 1, 128>}, {pipeline_mode = #tpu.pipeline_mode<synchronous>, transform_indices = @transform_3, window_bounds = array<i64: 128, 256>}, {transform_indices = @transform_4, window_bounds = array<i64: 1, 1, 128>}, {transform_indices = @transform_5, window_bounds = array<i64: 1, 1, 128>}, {transform_indices = @transform_6, window_bounds = array<i64: 1, 128, 384>}, {transform_indices = @transform_7, window_bounds = array<i64: 1, 1, 384>}, {transform_indices = @transform_8, window_bounds = array<i64: 1, 128, 128>}, {transform_indices = @transform_9, window_bounds = array<i64: 1, 1, 128>}, {transform_indices = @transform_10, window_bounds = array<i64: 1, 1, 128>}, {transform_indices = @transform_11, window_bounds = array<i64: 1, 1, 128>}, {transform_indices = @transform_12, window_bounds = array<i64: 1, 128, 512>}, {transform_indices = @transform_13, window_bounds = array<i64: 1, 1, 512>}, {transform_indices = @transform_14, window_bounds = array<i64: 1, 512, 128>}, {transform_indices = @transform_15, window_bounds = array<i64: 1, 1, 128>}, {transform_indices = @transform_16, window_bounds = array<i64: 1, 8, 256>}]} {
    %c0_i32 = arith.constant 0 : i32
    %0 = arith.cmpi eq, %arg1, %c0_i32 : i32
    %1 = arith.extui %0 : i1 to i32
    %c0_i32_0 = arith.constant 0 : i32
    %2 = arith.cmpi ne, %1, %c0_i32_0 : i32
    scf.if %2 {
      %c0_66 = arith.constant 0 : index
      %c0_67 = arith.constant 0 : index
      %c0_68 = arith.constant 0 : index
      %140 = vector.load %arg2[%c0_66, %c0_67, %c0_68] : memref<1x8x128xf32, #tpu.memory_space<vmem>>, vector<1x8x128xf32>
      %c0_69 = arith.constant 0 : index
      %c0_70 = arith.constant 0 : index
      %c0_71 = arith.constant 0 : index
      %141 = vector.load %arg19[%c0_69, %c0_70, %c0_71] : memref<1x8x128xf32, #tpu.memory_space<vmem>>, vector<1x8x128xf32>
      tpu.vector_store %arg19[%c0_69, %c0_70, %c0_71], %140 {strides = array<i32>} : memref<1x8x128xf32, #tpu.memory_space<vmem>>, vector<1x8x128xf32>,
    } else {
    }
    %c0 = arith.constant 0 : index
    %c0_1 = arith.constant 0 : index
    %c0_2 = arith.constant 0 : index
    %3 = vector.load %arg19[%c0, %c0_1, %c0_2] : memref<1x8x128xf32, #tpu.memory_space<vmem>>, vector<1x8x128xf32>
    %4 = vector.shape_cast %3 : vector<1x8x128xf32> to vector<8x128xf32>
    %c0_3 = arith.constant 0 : index
    %c0_4 = arith.constant 0 : index
    %c0_5 = arith.constant 0 : index
    %5 = vector.load %arg6[%c0_3, %c0_4, %c0_5] : memref<1x1x128xf32, #tpu.memory_space<vmem>>, vector<1x1x128xf32>
    %6 = vector.shape_cast %5 : vector<1x1x128xf32> to vector<1x128xf32>
    %c0_6 = arith.constant 0 : index
    %c0_7 = arith.constant 0 : index
    %c0_8 = arith.constant 0 : index
    %7 = vector.load %arg7[%c0_6, %c0_7, %c0_8] : memref<1x1x128xf32, #tpu.memory_space<vmem>>, vector<1x1x128xf32>
    %8 = vector.shape_cast %7 : vector<1x1x128xf32> to vector<1x128xf32>
    %cst = arith.constant dense<0.000000e+00> : vector<8xf32>
    %9 = vector.multi_reduction <add>, %4, %cst [1] : vector<8x128xf32> to vector<8xf32>
    %10 = vector.shape_cast %9 : vector<8xf32> to vector<8x1xf32>
    %cst_9 = arith.constant 1.280000e+02 : f32
    %11 = vector.broadcast %cst_9 : f32 to vector<8x1xf32>
    %12 = arith.divf %10, %11 : vector<8x1xf32>
    %13 = vector.broadcast %12 : vector<8x1xf32> to vector<8x128xf32>
    %14 = arith.subf %4, %13 : vector<8x128xf32>
    %15 = arith.mulf %14, %14 : vector<8x128xf32>
    %cst_10 = arith.constant dense<0.000000e+00> : vector<8xf32>
    %16 = vector.multi_reduction <add>, %15, %cst_10 [1] : vector<8x128xf32> to vector<8xf32>
    %17 = vector.shape_cast %16 : vector<8xf32> to vector<8x1xf32>
    %cst_11 = arith.constant 1.280000e+02 : f32
    %18 = vector.broadcast %cst_11 : f32 to vector<8x1xf32>
    %19 = arith.divf %17, %18 : vector<8x1xf32>
    %20 = vector.broadcast %12 : vector<8x1xf32> to vector<8x128xf32>
    %21 = arith.subf %4, %20 : vector<8x128xf32>
    %cst_12 = arith.constant 9.99999974E-6 : f32
    %22 = vector.broadcast %cst_12 : f32 to vector<8x1xf32>
    %23 = arith.addf %19, %22 : vector<8x1xf32>
    %24 = math.rsqrt %23 : vector<8x1xf32>
    %25 = vector.broadcast %24 : vector<8x1xf32> to vector<8x128xf32>
    %26 = arith.mulf %21, %25 : vector<8x128xf32>
    %27 = vector.broadcast %6 : vector<1x128xf32> to vector<8x128xf32>
    %28 = arith.mulf %26, %27 : vector<8x128xf32>
    %29 = vector.broadcast %8 : vector<1x128xf32> to vector<8x128xf32>
    %30 = arith.addf %28, %29 : vector<8x128xf32>
    %31 = arith.truncf %30 : vector<8x128xf32> to vector<8x128xbf16>
    %c0_13 = arith.constant 0 : index
    %c0_14 = arith.constant 0 : index
    %c0_15 = arith.constant 0 : index
    %32 = vector.load %arg8[%c0_13, %c0_14, %c0_15] : memref<1x128x384xbf16, #tpu.memory_space<vmem>>, vector<1x128x384xbf16>
    %33 = vector.shape_cast %32 : vector<1x128x384xbf16> to vector<128x384xbf16>
    %cst_16 = arith.constant dense<0.000000e+00> : vector<8x384xf32>
    %34 = tpu.matmul %31, %33, %cst_16 {dimension_numbers = #tpu.dot_dimension_numbers<[1], [0], [0], [1], [0, 0, 1, 1], [], []>} : vector<8x128xbf16>, vector<128x384xbf16>, vector<8x384xf32> -> vector<8x384xf32>
    %c0_17 = arith.constant 0 : index
    %c0_18 = arith.constant 0 : index
    %c0_19 = arith.constant 0 : index
    %35 = vector.load %arg9[%c0_17, %c0_18, %c0_19] : memref<1x1x384xf32, #tpu.memory_space<vmem>>, vector<1x1x384xf32>
    %36 = vector.shape_cast %35 : vector<1x1x384xf32> to vector<1x384xf32>
    %37 = vector.broadcast %36 : vector<1x384xf32> to vector<8x384xf32>
    %38 = arith.addf %34, %37 : vector<8x384xf32>
    %39 = vector.extract_strided_slice %38 {offsets = [0, 0], sizes = [8, 128], strides = [1, 1]} : vector<8x384xf32> to vector<8x128xf32>
    %40 = vector.shape_cast %39 : vector<8x128xf32> to vector<8x4x32xf32>
    %41 = vector.extract_strided_slice %38 {offsets = [0, 128], sizes = [8, 128], strides = [1, 1]} : vector<8x384xf32> to vector<8x128xf32>
    %42 = vector.shape_cast %41 : vector<8x128xf32> to vector<8x4x32xf32>
    %43 = vector.extract_strided_slice %38 {offsets = [0, 256], sizes = [8, 128], strides = [1, 1]} : vector<8x384xf32> to vector<8x128xf32>
    %44 = vector.shape_cast %43 : vector<8x128xf32> to vector<8x4x32xf32>
    %45 = tpu.iota {dimensions = array<i32: 0>} : vector<8x8xi32>
    %46 = tpu.iota {dimensions = array<i32: 1>} : vector<8x8xi32>
    %47 = arith.cmpi sle, %46, %45 : vector<8x8xi32>
    %48 = vector.shape_cast %47 : vector<8x8xi1> to vector<1x8x8xi1>
    "tpu.trace_start"() <{level = 10 : i32, message = "thd,shd->hts"}> : () -> ()
    %cst_20 = arith.constant dense<0.000000e+00> : vector<4x8x8xf32>
    %49 = tpu.matmul %40, %42, %cst_20 {dimension_numbers = #tpu.dot_dimension_numbers<[2], [2], [0], [0], [0, 1, 0, 0, 1, 0], [1], [1]>} : vector<8x4x32xf32>, vector<8x4x32xf32>, vector<4x8x8xf32> -> vector<4x8x8xf32>
    "tpu.trace_stop"() : () -> ()
    %cst_21 = arith.constant 0.176776692 : f32
    %50 = vector.broadcast %cst_21 : f32 to vector<4x8x8xf32>
    %51 = arith.mulf %49, %50 : vector<4x8x8xf32>
    %cst_22 = arith.constant -1.000000e+30 : f32
    %52 = vector.shape_cast %48 : vector<1x8x8xi1> to vector<1x8x8xi1>
    %53 = vector.broadcast %52 : vector<1x8x8xi1> to vector<4x8x8xi1>
    %54 = vector.broadcast %cst_22 : f32 to vector<4x8x8xf32>
    %55 = arith.select %53, %51, %54 : vector<4x8x8xi1>, vector<4x8x8xf32>
    %cst_23 = arith.constant dense<0xFF800000> : vector<4x8xf32>
    %56 = vector.multi_reduction <maximumf>, %55, %cst_23 [2] : vector<4x8x8xf32> to vector<4x8xf32>
    %57 = vector.shape_cast %56 : vector<4x8xf32> to vector<4x8x1xf32>
    %58 = vector.broadcast %57 : vector<4x8x1xf32> to vector<4x8x8xf32>
    %59 = arith.subf %55, %58 : vector<4x8x8xf32>
    %60 = math.exp %59 : vector<4x8x8xf32>
    %cst_24 = arith.constant dense<0.000000e+00> : vector<4x8xf32>
    %61 = vector.multi_reduction <add>, %60, %cst_24 [2] : vector<4x8x8xf32> to vector<4x8xf32>
    %62 = vector.shape_cast %61 : vector<4x8xf32> to vector<4x8x1xf32>
    %63 = tpu.reciprocal %62 {approx = true} : vector<4x8x1xf32> -> vector<4x8x1xf32>
    %64 = vector.broadcast %63 : vector<4x8x1xf32> to vector<4x8x8xf32>
    %65 = arith.mulf %60, %64 : vector<4x8x8xf32>
    "tpu.trace_start"() <{level = 10 : i32, message = "hts,shd->thd"}> : () -> ()
    %cst_25 = arith.constant dense<0.000000e+00> : vector<4x32x8xf32>
    %66 = tpu.matmul %44, %65, %cst_25 {dimension_numbers = #tpu.dot_dimension_numbers<[0], [2], [2], [1], [0, 1, 0, 2, 1, 1], [1], [0]>} : vector<8x4x32xf32>, vector<4x8x8xf32>, vector<4x32x8xf32> -> vector<4x32x8xf32>
    %67 = tpu.transpose %66, [2, 0, 1] : vector<4x32x8xf32> -> vector<8x4x32xf32>
    "tpu.trace_stop"() : () -> ()
    %68 = vector.shape_cast %67 : vector<8x4x32xf32> to vector<8x128xf32>
    %69 = arith.truncf %68 : vector<8x128xf32> to vector<8x128xbf16>
    %c0_26 = arith.constant 0 : index
    %c0_27 = arith.constant 0 : index
    %c0_28 = arith.constant 0 : index
    %70 = vector.load %arg10[%c0_26, %c0_27, %c0_28] : memref<1x128x128xbf16, #tpu.memory_space<vmem>>, vector<1x128x128xbf16>
    %71 = vector.shape_cast %70 : vector<1x128x128xbf16> to vector<128x128xbf16>
    %cst_29 = arith.constant dense<0.000000e+00> : vector<8x128xf32>
    %72 = tpu.matmul %69, %71, %cst_29 {dimension_numbers = #tpu.dot_dimension_numbers<[1], [0], [0], [1], [0, 0, 1, 1], [], []>} : vector<8x128xbf16>, vector<128x128xbf16>, vector<8x128xf32> -> vector<8x128xf32>
    %c0_30 = arith.constant 0 : index
    %c0_31 = arith.constant 0 : index
    %c0_32 = arith.constant 0 : index
    %73 = vector.load %arg11[%c0_30, %c0_31, %c0_32] : memref<1x1x128xf32, #tpu.memory_space<vmem>>, vector<1x1x128xf32>
    %74 = vector.shape_cast %73 : vector<1x1x128xf32> to vector<1x128xf32>
    %75 = vector.broadcast %74 : vector<1x128xf32> to vector<8x128xf32>
    %76 = arith.addf %72, %75 : vector<8x128xf32>
    %77 = arith.addf %4, %76 : vector<8x128xf32>
    %c0_33 = arith.constant 0 : index
    %c0_34 = arith.constant 0 : index
    %c0_35 = arith.constant 0 : index
    %78 = vector.load %arg12[%c0_33, %c0_34, %c0_35] : memref<1x1x128xf32, #tpu.memory_space<vmem>>, vector<1x1x128xf32>
    %79 = vector.shape_cast %78 : vector<1x1x128xf32> to vector<1x128xf32>
    %c0_36 = arith.constant 0 : index
    %c0_37 = arith.constant 0 : index
    %c0_38 = arith.constant 0 : index
    %80 = vector.load %arg13[%c0_36, %c0_37, %c0_38] : memref<1x1x128xf32, #tpu.memory_space<vmem>>, vector<1x1x128xf32>
    %81 = vector.shape_cast %80 : vector<1x1x128xf32> to vector<1x128xf32>
    %cst_39 = arith.constant dense<0.000000e+00> : vector<8xf32>
    %82 = vector.multi_reduction <add>, %77, %cst_39 [1] : vector<8x128xf32> to vector<8xf32>
    %83 = vector.shape_cast %82 : vector<8xf32> to vector<8x1xf32>
    %cst_40 = arith.constant 1.280000e+02 : f32
    %84 = vector.broadcast %cst_40 : f32 to vector<8x1xf32>
    %85 = arith.divf %83, %84 : vector<8x1xf32>
    %86 = vector.broadcast %85 : vector<8x1xf32> to vector<8x128xf32>
    %87 = arith.subf %77, %86 : vector<8x128xf32>
    %88 = arith.mulf %87, %87 : vector<8x128xf32>
    %cst_41 = arith.constant dense<0.000000e+00> : vector<8xf32>
    %89 = vector.multi_reduction <add>, %88, %cst_41 [1] : vector<8x128xf32> to vector<8xf32>
    %90 = vector.shape_cast %89 : vector<8xf32> to vector<8x1xf32>
    %cst_42 = arith.constant 1.280000e+02 : f32
    %91 = vector.broadcast %cst_42 : f32 to vector<8x1xf32>
    %92 = arith.divf %90, %91 : vector<8x1xf32>
    %93 = vector.broadcast %85 : vector<8x1xf32> to vector<8x128xf32>
    %94 = arith.subf %77, %93 : vector<8x128xf32>
    %cst_43 = arith.constant 9.99999974E-6 : f32
    %95 = vector.broadcast %cst_43 : f32 to vector<8x1xf32>
    %96 = arith.addf %92, %95 : vector<8x1xf32>
    %97 = math.rsqrt %96 : vector<8x1xf32>
    %98 = vector.broadcast %97 : vector<8x1xf32> to vector<8x128xf32>
    %99 = arith.mulf %94, %98 : vector<8x128xf32>
    %100 = vector.broadcast %79 : vector<1x128xf32> to vector<8x128xf32>
    %101 = arith.mulf %99, %100 : vector<8x128xf32>
    %102 = vector.broadcast %81 : vector<1x128xf32> to vector<8x128xf32>
    %103 = arith.addf %101, %102 : vector<8x128xf32>
    %104 = arith.truncf %103 : vector<8x128xf32> to vector<8x128xbf16>
    %c0_44 = arith.constant 0 : index
    %c0_45 = arith.constant 0 : index
    %c0_46 = arith.constant 0 : index
    %105 = vector.load %arg14[%c0_44, %c0_45, %c0_46] : memref<1x128x512xbf16, #tpu.memory_space<vmem>>, vector<1x128x512xbf16>
    %106 = vector.shape_cast %105 : vector<1x128x512xbf16> to vector<128x512xbf16>
    %cst_47 = arith.constant dense<0.000000e+00> : vector<8x512xf32>
    %107 = tpu.matmul %104, %106, %cst_47 {dimension_numbers = #tpu.dot_dimension_numbers<[1], [0], [0], [1], [0, 0, 1, 1], [], []>} : vector<8x128xbf16>, vector<128x512xbf16>, vector<8x512xf32> -> vector<8x512xf32>
    %c0_48 = arith.constant 0 : index
    %c0_49 = arith.constant 0 : index
    %c0_50 = arith.constant 0 : index
    %108 = vector.load %arg15[%c0_48, %c0_49, %c0_50] : memref<1x1x512xf32, #tpu.memory_space<vmem>>, vector<1x1x512xf32>
    %109 = vector.shape_cast %108 : vector<1x1x512xf32> to vector<1x512xf32>
    %110 = vector.broadcast %109 : vector<1x512xf32> to vector<8x512xf32>
    %111 = arith.addf %107, %110 : vector<8x512xf32>
    %cst_51 = arith.constant 5.000000e-01 : f32
    %112 = vector.broadcast %cst_51 : f32 to vector<8x512xf32>
    %113 = arith.mulf %112, %111 : vector<8x512xf32>
    %cst_52 = arith.constant 4.471500e-02 : f32
    %114 = vector.broadcast %cst_52 : f32 to vector<8x512xf32>
    %115 = arith.mulf %114, %111 : vector<8x512xf32>
    %116 = arith.mulf %115, %111 : vector<8x512xf32>
    %117 = arith.mulf %116, %111 : vector<8x512xf32>
    %118 = arith.addf %111, %117 : vector<8x512xf32>
    %cst_53 = arith.constant 0.797884583 : f32
    %119 = vector.broadcast %cst_53 : f32 to vector<8x512xf32>
    %120 = arith.mulf %119, %118 : vector<8x512xf32>
    %121 = math.tanh %120 : vector<8x512xf32>
    %cst_54 = arith.constant 1.000000e+00 : f32
    %122 = vector.broadcast %cst_54 : f32 to vector<8x512xf32>
    %123 = arith.addf %122, %121 : vector<8x512xf32>
    %124 = arith.mulf %113, %123 : vector<8x512xf32>
    %125 = arith.truncf %124 : vector<8x512xf32> to vector<8x512xbf16>
    %c0_55 = arith.constant 0 : index
    %c0_56 = arith.constant 0 : index
    %c0_57 = arith.constant 0 : index
    %126 = vector.load %arg16[%c0_55, %c0_56, %c0_57] : memref<1x512x128xbf16, #tpu.memory_space<vmem>>, vector<1x512x128xbf16>
    %127 = vector.shape_cast %126 : vector<1x512x128xbf16> to vector<512x128xbf16>
    %cst_58 = arith.constant dense<0.000000e+00> : vector<8x128xf32>
    %128 = tpu.matmul %125, %127, %cst_58 {dimension_numbers = #tpu.dot_dimension_numbers<[1], [0], [0], [1], [0, 0, 1, 1], [], []>} : vector<8x512xbf16>, vector<512x128xbf16>, vector<8x128xf32> -> vector<8x128xf32>
    %c0_59 = arith.constant 0 : index
    %c0_60 = arith.constant 0 : index
    %c0_61 = arith.constant 0 : index
    %129 = vector.load %arg17[%c0_59, %c0_60, %c0_61] : memref<1x1x128xf32, #tpu.memory_space<vmem>>, vector<1x1x128xf32>
    %130 = vector.shape_cast %129 : vector<1x1x128xf32> to vector<1x128xf32>
    %131 = vector.broadcast %130 : vector<1x128xf32> to vector<8x128xf32>
    %132 = arith.addf %128, %131 : vector<8x128xf32>
    %133 = arith.addf %77, %132 : vector<8x128xf32>
    %c0_62 = arith.constant 0 : index
    %c0_63 = arith.constant 0 : index
    %c0_64 = arith.constant 0 : index
    %134 = vector.load %arg19[%c0_62, %c0_63, %c0_64] : memref<1x8x128xf32, #tpu.memory_space<vmem>>, vector<1x8x128xf32>
    %135 = vector.shape_cast %134 : vector<1x8x128xf32> to vector<8x128xf32>
    %136 = vector.shape_cast %133 : vector<8x128xf32> to vector<1x8x128xf32>
    tpu.vector_store %arg19[%c0_62, %c0_63, %c0_64], %136 {strides = array<i32>} : memref<1x8x128xf32, #tpu.memory_space<vmem>>, vector<1x8x128xf32>,
    %c1_i32 = arith.constant 1 : i32
    %137 = arith.cmpi eq, %arg1, %c1_i32 : i32
    %138 = arith.extui %137 : i1 to i32
    %c0_i32_65 = arith.constant 0 : i32
    %139 = arith.cmpi ne, %138, %c0_i32_65 : i32
    scf.if %139 {
      %c0_66 = arith.constant 0 : index
      %c0_67 = arith.constant 0 : index
      %140 = vector.load %arg3[%c0_66, %c0_67] : memref<1x128xf32, #tpu.memory_space<vmem>>, vector<1x128xf32>
      %c0_68 = arith.constant 0 : index
      %c0_69 = arith.constant 0 : index
      %141 = vector.load %arg4[%c0_68, %c0_69] : memref<1x128xf32, #tpu.memory_space<vmem>>, vector<1x128xf32>
      %cst_70 = arith.constant dense<0.000000e+00> : vector<8xf32>
      %142 = vector.multi_reduction <add>, %133, %cst_70 [1] : vector<8x128xf32> to vector<8xf32>
      %143 = vector.shape_cast %142 : vector<8xf32> to vector<8x1xf32>
      %cst_71 = arith.constant 1.280000e+02 : f32
      %144 = vector.broadcast %cst_71 : f32 to vector<8x1xf32>
      %145 = arith.divf %143, %144 : vector<8x1xf32>
      %146 = vector.broadcast %145 : vector<8x1xf32> to vector<8x128xf32>
      %147 = arith.subf %133, %146 : vector<8x128xf32>
      %148 = arith.mulf %147, %147 : vector<8x128xf32>
      %cst_72 = arith.constant dense<0.000000e+00> : vector<8xf32>
      %149 = vector.multi_reduction <add>, %148, %cst_72 [1] : vector<8x128xf32> to vector<8xf32>
      %150 = vector.shape_cast %149 : vector<8xf32> to vector<8x1xf32>
      %cst_73 = arith.constant 1.280000e+02 : f32
      %151 = vector.broadcast %cst_73 : f32 to vector<8x1xf32>
      %152 = arith.divf %150, %151 : vector<8x1xf32>
      %153 = vector.broadcast %145 : vector<8x1xf32> to vector<8x128xf32>
      %154 = arith.subf %133, %153 : vector<8x128xf32>
      %cst_74 = arith.constant 9.99999974E-6 : f32
      %155 = vector.broadcast %cst_74 : f32 to vector<8x1xf32>
      %156 = arith.addf %152, %155 : vector<8x1xf32>
      %157 = math.rsqrt %156 : vector<8x1xf32>
      %158 = vector.broadcast %157 : vector<8x1xf32> to vector<8x128xf32>
      %159 = arith.mulf %154, %158 : vector<8x128xf32>
      %160 = vector.broadcast %140 : vector<1x128xf32> to vector<8x128xf32>
      %161 = arith.mulf %159, %160 : vector<8x128xf32>
      %162 = vector.broadcast %141 : vector<1x128xf32> to vector<8x128xf32>
      %163 = arith.addf %161, %162 : vector<8x128xf32>
      %164 = arith.truncf %163 : vector<8x128xf32> to vector<8x128xbf16>
      %c0_75 = arith.constant 0 : index
      %c0_76 = arith.constant 0 : index
      %165 = vector.load %arg5[%c0_75, %c0_76] : memref<128x256xbf16, #tpu.memory_space<vmem>>, vector<128x256xbf16>
      %cst_77 = arith.constant dense<0.000000e+00> : vector<8x256xf32>
      %166 = tpu.matmul %164, %165, %cst_77 {dimension_numbers = #tpu.dot_dimension_numbers<[1], [0], [0], [1], [0, 0, 1, 1], [], []>} : vector<8x128xbf16>, vector<128x256xbf16>, vector<8x256xf32> -> vector<8x256xf32>
      %c0_78 = arith.constant 0 : index
      %c0_79 = arith.constant 0 : index
      %c0_80 = arith.constant 0 : index
      %167 = vector.load %arg18[%c0_78, %c0_79, %c0_80] : memref<1x8x256xf32, #tpu.memory_space<vmem>>, vector<1x8x256xf32>
      %168 = vector.shape_cast %167 : vector<1x8x256xf32> to vector<8x256xf32>
      %169 = vector.shape_cast %166 : vector<8x256xf32> to vector<1x8x256xf32>
      tpu.vector_store %arg18[%c0_78, %c0_79, %c0_80], %169 {strides = array<i32>} : memref<1x8x256xf32, #tpu.memory_space<vmem>>, vector<1x8x256xf32>,
    } else {
    }
    return
  }
  func.func @transform_0(%arg0: i32, %arg1: i32) -> (i32, i32, i32) {
    %c0_i32 = arith.constant 0 : i32
    %c0_i32_0 = arith.constant 0 : i32
    %c0_i32_1 = arith.constant 0 : i32
    return %arg0, %c0_i32, %c0_i32_0 : i32, i32, i32
  }
  func.func @transform_1(%arg0: i32, %arg1: i32) -> (i32, i32) {
    %c0_i32 = arith.constant 0 : i32
    %c0_i32_0 = arith.constant 0 : i32
    %c0_i32_1 = arith.constant 0 : i32
    return %c0_i32, %c0_i32_0 : i32, i32
  }
  func.func @transform_2(%arg0: i32, %arg1: i32) -> (i32, i32) {
    %c0_i32 = arith.constant 0 : i32
    %c0_i32_0 = arith.constant 0 : i32
    %c0_i32_1 = arith.constant 0 : i32
    return %c0_i32, %c0_i32_0 : i32, i32
  }
  func.func @transform_3(%arg0: i32, %arg1: i32) -> (i32, i32) {
    %c0_i32 = arith.constant 0 : i32
    %c0_i32_0 = arith.constant 0 : i32
    %c0_i32_1 = arith.constant 0 : i32
    return %c0_i32, %c0_i32_0 : i32, i32
  }
  func.func @transform_4(%arg0: i32, %arg1: i32) -> (i32, i32, i32) {
    %c0_i32 = arith.constant 0 : i32
    %c0_i32_0 = arith.constant 0 : i32
    %c0_i32_1 = arith.constant 0 : i32
    return %arg1, %c0_i32, %c0_i32_0 : i32, i32, i32
  }
  func.func @transform_5(%arg0: i32, %arg1: i32) -> (i32, i32, i32) {
    %c0_i32 = arith.constant 0 : i32
    %c0_i32_0 = arith.constant 0 : i32
    %c0_i32_1 = arith.constant 0 : i32
    return %arg1, %c0_i32, %c0_i32_0 : i32, i32, i32
  }
  func.func @transform_6(%arg0: i32, %arg1: i32) -> (i32, i32, i32) {
    %c0_i32 = arith.constant 0 : i32
    %c0_i32_0 = arith.constant 0 : i32
    %c0_i32_1 = arith.constant 0 : i32
    return %arg1, %c0_i32, %c0_i32_0 : i32, i32, i32
  }
  func.func @transform_7(%arg0: i32, %arg1: i32) -> (i32, i32, i32) {
    %c0_i32 = arith.constant 0 : i32
    %c0_i32_0 = arith.constant 0 : i32
    %c0_i32_1 = arith.constant 0 : i32
    return %arg1, %c0_i32, %c0_i32_0 : i32, i32, i32
  }
  func.func @transform_8(%arg0: i32, %arg1: i32) -> (i32, i32, i32) {
    %c0_i32 = arith.constant 0 : i32
    %c0_i32_0 = arith.constant 0 : i32
    %c0_i32_1 = arith.constant 0 : i32
    return %arg1, %c0_i32, %c0_i32_0 : i32, i32, i32
  }
  func.func @transform_9(%arg0: i32, %arg1: i32) -> (i32, i32, i32) {
    %c0_i32 = arith.constant 0 : i32
    %c0_i32_0 = arith.constant 0 : i32
    %c0_i32_1 = arith.constant 0 : i32
    return %arg1, %c0_i32, %c0_i32_0 : i32, i32, i32
  }
  func.func @transform_10(%arg0: i32, %arg1: i32) -> (i32, i32, i32) {
    %c0_i32 = arith.constant 0 : i32
    %c0_i32_0 = arith.constant 0 : i32
    %c0_i32_1 = arith.constant 0 : i32
    return %arg1, %c0_i32, %c0_i32_0 : i32, i32, i32
  }
  func.func @transform_11(%arg0: i32, %arg1: i32) -> (i32, i32, i32) {
    %c0_i32 = arith.constant 0 : i32
    %c0_i32_0 = arith.constant 0 : i32
    %c0_i32_1 = arith.constant 0 : i32
    return %arg1, %c0_i32, %c0_i32_0 : i32, i32, i32
  }
  func.func @transform_12(%arg0: i32, %arg1: i32) -> (i32, i32, i32) {
    %c0_i32 = arith.constant 0 : i32
    %c0_i32_0 = arith.constant 0 : i32
    %c0_i32_1 = arith.constant 0 : i32
    return %arg1, %c0_i32, %c0_i32_0 : i32, i32, i32
  }
  func.func @transform_13(%arg0: i32, %arg1: i32) -> (i32, i32, i32) {
    %c0_i32 = arith.constant 0 : i32
    %c0_i32_0 = arith.constant 0 : i32
    %c0_i32_1 = arith.constant 0 : i32
    return %arg1, %c0_i32, %c0_i32_0 : i32, i32, i32
  }
  func.func @transform_14(%arg0: i32, %arg1: i32) -> (i32, i32, i32) {
    %c0_i32 = arith.constant 0 : i32
    %c0_i32_0 = arith.constant 0 : i32
    %c0_i32_1 = arith.constant 0 : i32
    return %arg1, %c0_i32, %c0_i32_0 : i32, i32, i32
  }
  func.func @transform_15(%arg0: i32, %arg1: i32) -> (i32, i32, i32) {
    %c0_i32 = arith.constant 0 : i32
    %c0_i32_0 = arith.constant 0 : i32
    %c0_i32_1 = arith.constant 0 : i32
    return %arg1, %c0_i32, %c0_i32_0 : i32, i32, i32
  }
  func.func @transform_16(%arg0: i32, %arg1: i32) -> (i32, i32, i32) {
    %c0_i32 = arith.constant 0 : i32
    %c0_i32_0 = arith.constant 0 : i32
    %c0_i32_1 = arith.constant 0 : i32
    return %arg0, %c0_i32, %c0_i32_0 : i32, i32, i32
  }
}

</mosaic_0001>

<bundles_post_ra>
// kernel: gpt_forward.1
= control target key start
LH: loop header
LB: loop body
LE: loop exit
PB: predicated region body
PF: predicated region fallthrough
CT: control target
= control target key end

     0   :  { %s6257_s0 = inlined_call_operand.vmem [shape: f32[2,8,128], index: 0, kind: input, shape index: {}]   ;;  %s6258_s1 = inlined_call_operand.vmem [shape: f32[1,128], index: 1, kind: input, shape index: {}]   ;;  %s6259_s2 = inlined_call_operand.hbm [shape: f32[1,128], index: 2, kind: input, shape index: {}]   ;;  %s6260_s3 = inlined_call_operand.vmem [shape: bf16[128,256], index: 3, kind: input, shape index: {}]   ;;  %s6261_s4 = inlined_call_operand.hbm [shape: f32[2,1,128], index: 4, kind: input, shape index: {}]   ;;  %s6262_s5 = inlined_call_operand.hbm [shape: f32[2,1,128], index: 5, kind: input, shape index: {}]   ;;  %s6263_s6 = inlined_call_operand.hbm [shape: bf16[2,128,384], index: 6, kind: input, shape index: {}]   ;;  %s6264_s7 = inlined_call_operand.hbm [shape: f32[2,1,384], index: 7, kind: input, shape index: {}]   ;;  %s6265_s8 = inlined_call_operand.vmem [shape: bf16[2,128,128], index: 8, kind: input, shape index: {}]   ;;  %s6266_s9 = inlined_call_operand.hbm [shape: f32[2,1,128], index: 9, kind: input, shape index: {}]   ;;  %s6267_s10 = inlined_call_operand.hbm [shape: f32[2,1,128], index: 10, kind: input, shape index: {}]   ;;  %s6268_s11 = inlined_call_operand.hbm [shape: f32[2,1,128], index: 11, kind: input, shape index: {}]   ;;  %s6269_s12 = inlined_call_operand.hbm [shape: bf16[2,128,512], index: 12, kind: input, shape index: {}]   ;;  %s6270_s13 = inlined_call_operand.hbm [shape: f32[2,1,512], index: 13, kind: input, shape index: {}]   ;;  %s6271_s14 = inlined_call_operand.hbm [shape: bf16[2,512,128], index: 14, kind: input, shape index: {}]   ;;  %s6272_s15 = inlined_call_operand.hbm [shape: f32[2,1,128], index: 15, kind: input, shape index: {}]   ;;  %s6273_s16 = inlined_call_operand.hbm [shape: f32[2,8,256], index: 16, kind: output, shape index: {}]  }
   0x1   :  { %6308 = sst [smem:[#allocation41_spill]] %s6257_s0 }
   0x2   :  { %6309 = sst [smem:[#allocation42_spill]] %s6258_s1 }
   0x3   :  { %6310 = sst [smem:[#allocation43_spill]] %s6259_s2 }
   0x4   :  { %6311 = sst [smem:[#allocation44_spill]] %s6260_s3 }
   0x5   :  { %6312 = sst [smem:[#allocation45_spill]] %s6261_s4 }
   0x6   :  { %6313 = sst [smem:[#allocation46_spill]] %s6262_s5 }
   0x7   :  { %6314 = sst [smem:[#allocation47_spill]] %s6263_s6 }
   0x8   :  { %6315 = sst [smem:[#allocation48_spill]] %s6264_s7 }
   0x9   :  { %6316 = sst [smem:[#allocation49_spill]] %s6265_s8 }
   0xa   :  { %6317 = sst [smem:[#allocation50_spill]] %s6266_s9 }
   0xb   :  { %6318 = sst [smem:[#allocation51_spill]] %s6267_s10 }
   0xc   :  { %6319 = sst [smem:[#allocation52_spill]] %s6268_s11 }
   0xd   :  { %6320 = sst [smem:[#allocation53_spill]] %s6269_s12 }
   0xe   :  { %6321 = sst [smem:[#allocation54_spill]] %s6270_s13 }
   0xf   :  { %6322 = sst [smem:[#allocation55_spill]] %s6271_s14 }
  0x10   :  { %6323 = sst [smem:[#allocation56_spill]] %s6272_s15 }
  0x11   :  { %6324 = sst [smem:[#allocation57_spill]] %s6273_s16 }
  0x12   :  { %21 = vsyncpa [#allocation4], 0 }
  0x13   :  { %22 = vsyncpa [#allocation7], 0 }
  0x14   :  { %24 = vsyncpa [#allocation7 + $0x1], 0 }
  0x15   :  { %25 = vsyncpa [#allocation10], 0 }
  0x16   :  { %27 = vsyncpa [#allocation10 + $0x1], 0 }
  0x17   :  { %28 = vsyncpa [#allocation13], 0 }
  0x18   :  { %30 = vsyncpa [#allocation13 + $0x1], 0 }
  0x19   :  { %31 = vsyncpa [#allocation16], 0 }
  0x1a   :  { %33 = vsyncpa [#allocation16 + $0x1], 0 }
  0x1b   :  { %34 = vsyncpa [#allocation19], 0 }
  0x1c   :  { %36 = vsyncpa [#allocation19 + $0x1], 0 }
  0x1d   :  { %37 = vsyncpa [#allocation22], 0 }
  0x1e   :  { %39 = vsyncpa [#allocation22 + $0x1], 0 }
  0x1f   :  { %40 = vsyncpa [#allocation5], 0 }
  0x20   :  { %42 = vsyncpa [#allocation5 + $0x1], 0  ;;  %s5332_s21 = smov 0   ;;  %s5334_s22 = smov 0  }
  0x21   :  { %s5336_s23 = smov 0   ;;  %s5338_s24 = smov 0  }
  0x22   :  { %s5340_s25 = smov 0   ;;  %s5342_s26 = smov 0  }
  0x23   :  { %s5344_s27 = smov 0   ;;  %s5346_s28 = smov 0  }
  0x24   :  { %s5348_s29 = smov 0   ;;  %s5350_s30 = smov 0  }
  0x25   :  { %s5352_s0 = smov 0  }
  0x26 LB: > { %6325 = sst [smem:[#allocation32_spill]] %s5184_s23  ;;  %p163_p0 = scmp.ne.s32.totalorder %s5196_s26, %s5192_s25  ;;  %s5216_s0 = sphi %s5352_s0, %s48_s0   ;;  %s5212_s30 = sphi %s5350_s30, %s6394_s30   ;;  %s5208_s29 = sphi %s5348_s29, %s6401_s29   ;;  %s5204_s28 = sphi %s5346_s28, %s6392_s28   ;;  %s5200_s27 = sphi %s5344_s27, %s6400_s27   ;;  %s5196_s26 = sphi %s5342_s26, %s6391_s26   ;;  %s5192_s25 = sphi %s5340_s25, %s6399_s25   ;;  %s5188_s24 = sphi %s5338_s24, %s6398_s24   ;;  %s5184_s23 = sphi %s5336_s23, %s6397_s23   ;;  %s5180_s22 = sphi %s5334_s22, %s6396_s22   ;;  %s5176_s21 = sphi %s5332_s21, %s6395_s21  }
  0x27   : > { %6326 = sst [smem:[#allocation33_spill]] %s5196_s26  ;;  %p164_p1 = scmp.eq.s32.totalorder %s5216_s0, 0 }
  0x28   : > { %6327 = sst [smem:[#allocation34_spill]] %s5200_s27  ;;  %p4385_p2 = scmp.lt.s32.totalorder %s5216_s0, 4 }
  0x29   : > { %6328 = sst [smem:[#allocation35_spill]] %s5204_s28  ;;  %p165_p3 = por %p164_p1, %p163_p0 }
  0x2a   : > { %6329 = sst [smem:[#allocation36_spill]] %s5212_s30  ;;  %s5392_s17 = sand.u32 1, %s5216_s0  }
  0x2b   : > { %s5395_s18 = sand.u32 1, %s5196_s26   ;;  %s5398_s19 = sshll.u32 %s5208_s29, 4 }
  0x2c   : > { %s6330_s4 = sld [smem:[#allocation45_spill]]  ;;  %s532_s3 = scalar_lea.vmem [#allocation6], %s5395_s18 }
  0x2d   : > { %s539_s8 = sshll.u32 %s532_s3, 4  ;;  %p5409_p4 = pnand %p4385_p2, %p165_p3  ;;  %s5407_s8 = int_to_ptr.vmem [resolvable:$true] %s539_s8 }
  0x2e   : > { %s4309_s15 = smul.u32 3072, %s5208_s29  ;;  %s6284_s14 = scalar_lea.sflag [#allocation7], %s5392_s17 }
  0x2f   : > { %s6331_s27 = scalar_select %p5409_p4, 1, 0 }
  0x30   : > { %p5420_p6 = pneg %p5409_p4 }
  0x32   : > { %s5404_s1 = scalar_lea.hbm %s6330_s4, %s5398_s19  ;;  %s4717_s10 = scalar_lea.hbm %s6330_s4, 32 }
  0x33   : > { %s4712_s12 = scalar_lea.hbm %s5404_s1, 16  ;;  %p4718_p9 = scmp.lt.u32.totalorder %s5404_s1, %s6330_s4 }
  0x34   : > { %p4713_p5 = scmp.ne.s32.totalorder %s5404_s1, %s4712_s12  ;;  %p4719_p10 = scmp.lt.u32.totalorder %s4717_s10, %s4712_s12 }
  0x35   : > { %p4721_p12 = scmp.lt.u32.totalorder %s4712_s12, %s5404_s1 }
  0x36   : > { %p4715_p7 = pnand %p5420_p6, %p4713_p5  ;;  %p4720_p11 = por %p4719_p10, %p4718_p9 }
  0x38   : > { %p4716_p8 = pneg %p4715_p7  ;;  %p4722_p13 = por %p4721_p12, %p4720_p11 }
  0x3a   : > { %p4723_p0 = pnand %p4722_p13, %p4716_p8 }
  0x3c   : > { %4726 = shalt.err (!%p4723_p0)
}
  0x3d   : > { %s4727_s28 = scalar_lea.vmem %s5407_s8, 16  ;;  %s5218_s3 = smov [#allocation6]  }
  0x3e   : > { %p4728_p1 = scmp.ne.s32.totalorder %s5407_s8, %s4727_s28  ;;  %s4732_s20 = sshll.u32 %s5218_s3, 4  ;;  %s4733_s20 = int_to_ptr.vmem [resolvable:$false] %s4732_s20 }
  0x3f   : > { %s4734_s2 = scalar_lea.vmem %s4733_s20, 32  ;;  %p4735_p5 = scmp.lt.s32.totalorder %s5407_s8, %s4733_s20 }
  0x40   : > { %p4730_p2 = pnand %p4728_p1, %p5420_p6  ;;  %p4736_p7 = scmp.lt.s32.totalorder %s4734_s2, %s4727_s28 }
  0x42   : > { %p4731_p3 = pneg %p4730_p2  ;;  %p4737_p9 = por %p4736_p7, %p4735_p5 }
  0x44   : > { %p4738_p10 = pnand %p4737_p9, %p4731_p3 }
  0x46   : > { %4741 = shalt.err (!%p4738_p10)
}
  0x47   : > { %4349 = dma.hbm_to_vmem [thread:$0]  (!%p5409_p4), %s5404_s1, 16, %s5407_s8, %s6284_s14  }
  0x48   : > { %s6333_s6 = sld [smem:[#allocation47_spill]]  ;;  %s6334_s28 = smul.u32 192, %s5395_s18 }
  0x49   : > { %s6291_s2 = scalar_lea.sflag [#allocation10], %s5392_s17 }
  0x4a   : > { %s567_s3 = scalar_lea.vmem [#allocation9], %s6334_s28 }
  0x4b   : > { %s574_s20 = sshll.u32 %s567_s3, 4  ;;  %s5454_s20 = int_to_ptr.vmem [resolvable:$true] %s574_s20 }
  0x4e   : > { %s5450_s12 = scalar_lea.hbm %s6333_s6, %s4309_s15  ;;  %s4747_s15 = scalar_lea.hbm %s6333_s6, 6144 }
  0x4f   : > { %s4742_s4 = scalar_lea.hbm %s5450_s12, 3072  ;;  %p4748_p13 = scmp.lt.u32.totalorder %s5450_s12, %s6333_s6 }
  0x50   : > { %p4743_p8 = scmp.ne.s32.totalorder %s5450_s12, %s4742_s4  ;;  %p4749_p0 = scmp.lt.u32.totalorder %s4747_s15, %s4742_s4 }
  0x51   : > { %p4751_p2 = scmp.lt.u32.totalorder %s4742_s4, %s5450_s12 }
  0x52   : > { %p4745_p11 = pnand %p4743_p8, %p5420_p6  ;;  %p4750_p1 = por %p4749_p0, %p4748_p13 }
  0x54   : > { %p4746_p12 = pneg %p4745_p11  ;;  %p4752_p3 = por %p4751_p2, %p4750_p1 }
  0x56   : > { %p4753_p5 = pnand %p4752_p3, %p4746_p12 }
  0x58   : > { %4756 = shalt.err (!%p4753_p5)
}
  0x59   : > { %s4757_s28 = scalar_lea.vmem %s5454_s20, 3072  ;;  %s5219_s3 = smov [#allocation9]  }
  0x5a   : > { %p4758_p7 = scmp.ne.s32.totalorder %s5454_s20, %s4757_s28  ;;  %s4762_s1 = sshll.u32 %s5219_s3, 4  ;;  %s4763_s1 = int_to_ptr.vmem [resolvable:$false] %s4762_s1 }
  0x5b   : > { %s4764_s8 = scalar_lea.vmem %s4763_s1, 6144  ;;  %p4765_p8 = scmp.lt.s32.totalorder %s5454_s20, %s4763_s1 }
  0x5c   : > { %p4760_p9 = pnand %p4758_p7, %p5420_p6  ;;  %p4766_p11 = scmp.lt.s32.totalorder %s4764_s8, %s4757_s28 }
  0x5e   : > { %p4761_p10 = pneg %p4760_p9  ;;  %p4767_p13 = por %p4766_p11, %p4765_p8 }
  0x60   : > { %p4768_p0 = pnand %p4767_p13, %p4761_p10 }
  0x62   : > { %4771 = shalt.err (!%p4768_p0)
}
  0x63   : > { %s5220_s4 = smov 192   ;;  %s5221_s15 = smov 12  }
  0x64   : > { %4355 = dma.hbm_to_vmem [thread:$0]  (!%p5409_p4), %s5450_s12, 3072, %s5454_s20, %s6291_s2, %s5220_s4, %s5220_s4, %s5221_s15  }
  0x65   : > { %s6335_s9 = sld [smem:[#allocation50_spill]]  ;;  %s614_s3 = scalar_lea.vmem [#allocation12], %s5395_s18 }
  0x66   : > { %s621_s1 = sshll.u32 %s614_s3, 4  ;;  %s6287_s8 = scalar_lea.sflag [#allocation13], %s5392_s17  ;;  %s622_s1 = int_to_ptr.vmem [resolvable:$true] %s621_s1 }
  0x6b   : > { %s5484_s28 = scalar_lea.hbm %s6335_s9, %s5398_s19  ;;  %s4777_s20 = scalar_lea.hbm %s6335_s9, 32 }
  0x6c   : > { %s4772_s14 = scalar_lea.hbm %s5484_s28, 16  ;;  %p4778_p3 = scmp.lt.u32.totalorder %s5484_s28, %s6335_s9 }
  0x6d   : > { %p4773_p12 = scmp.ne.s32.totalorder %s5484_s28, %s4772_s14  ;;  %p4779_p5 = scmp.lt.u32.totalorder %s4777_s20, %s4772_s14 }
  0x6e   : > { %p4781_p9 = scmp.lt.u32.totalorder %s4772_s14, %s5484_s28 }
  0x6f   : > { %p4775_p1 = pnand %p4773_p12, %p5420_p6  ;;  %p4780_p7 = por %p4779_p5, %p4778_p3 }
  0x71   : > { %p4776_p2 = pneg %p4775_p1  ;;  %p4782_p10 = por %p4781_p9, %p4780_p7 }
  0x73   : > { %p4783_p8 = pnand %p4782_p10, %p4776_p2 }
  0x75   : > { %4786 = shalt.err (!%p4783_p8)
}
  0x76   : > { %s4787_s7 = scalar_lea.vmem %s622_s1, 16  ;;  %s5222_s10 = smov [#allocation12]  }
  0x77   : > { %p4788_p11 = scmp.ne.s32.totalorder %s622_s1, %s4787_s7  ;;  %s4792_s3 = sshll.u32 %s5222_s10, 4  ;;  %s4793_s3 = int_to_ptr.vmem [resolvable:$false] %s4792_s3 }
  0x78   : > { %s4794_s6 = scalar_lea.vmem %s4793_s3, 32  ;;  %p4795_p12 = scmp.lt.s32.totalorder %s622_s1, %s4793_s3 }
  0x79   : > { %p4790_p13 = pnand %p4788_p11, %p5420_p6  ;;  %p4796_p1 = scmp.lt.s32.totalorder %s4794_s6, %s4787_s7 }
  0x7b   : > { %p4791_p0 = pneg %p4790_p13  ;;  %p4797_p4 = por %p4796_p1, %p4795_p12 }
  0x7d   : > { %p4798_p3 = pnand %p4797_p4, %p4791_p0 }
  0x7f   : > { %4801 = shalt.err (!%p4798_p3)
}
  0x80   : > { %p6336_p5 = scmp.ne.s32.totalorder %s6331_s27, 0  ;;  %s6337_s11 = sld [smem:[#allocation52_spill]] }
  0x81   : > { %s648_s4 = scalar_lea.vmem [#allocation15], %s5395_s18  ;;  %s3892_s7 = sshll.u32 %s5395_s18, 2 }
  0x82   : > { %4361 = dma.hbm_to_vmem [thread:$0]  (!%p6336_p5), %s5484_s28, 16, %s622_s1, %s6287_s8  }
  0x83   : > { %s655_s15 = sshll.u32 %s648_s4, 4  ;;  %s6288_s10 = scalar_lea.sflag [#allocation16], %s5392_s17  ;;  %s5514_s15 = int_to_ptr.vmem [resolvable:$true] %s655_s15 }
  0x86   : > { %s5511_s20 = scalar_lea.hbm %s6337_s11, %s5398_s19  ;;  %s4807_s6 = scalar_lea.hbm %s6337_s11, 32 }
  0x87   : > { %s4802_s3 = scalar_lea.hbm %s5511_s20, 16  ;;  %p4808_p9 = scmp.lt.u32.totalorder %s5511_s20, %s6337_s11 }
  0x88   : > { %p4803_p4 = scmp.ne.s32.totalorder %s5511_s20, %s4802_s3  ;;  %p4809_p10 = scmp.lt.u32.totalorder %s4807_s6, %s4802_s3 }
  0x89   : > { %p4811_p11 = scmp.lt.u32.totalorder %s4802_s3, %s5511_s20 }
  0x8a   : > { %p4805_p2 = pnand %p4803_p4, %p5420_p6  ;;  %p4810_p8 = por %p4809_p10, %p4808_p9 }
  0x8c   : > { %p4806_p7 = pneg %p4805_p2  ;;  %p4812_p13 = por %p4811_p11, %p4810_p8 }
  0x8e   : > { %p4813_p0 = pnand %p4812_p13, %p4806_p7 }
  0x90   : > { %4816 = shalt.err (!%p4813_p0)
}
  0x91   : > { %s4817_s4 = scalar_lea.vmem %s5514_s15, 16  ;;  %s5223_s28 = smov [#allocation15]  }
  0x92   : > { %p4818_p12 = scmp.ne.s32.totalorder %s5514_s15, %s4817_s4  ;;  %s4822_s1 = sshll.u32 %s5223_s28, 4  ;;  %s4823_s1 = int_to_ptr.vmem [resolvable:$false] %s4822_s1 }
  0x93   : > { %s4824_s14 = scalar_lea.vmem %s4823_s1, 32  ;;  %p4825_p4 = scmp.lt.s32.totalorder %s5514_s15, %s4823_s1 }
  0x94   : > { %p4820_p1 = pnand %p4818_p12, %p5420_p6  ;;  %p4826_p2 = scmp.lt.s32.totalorder %s4824_s14, %s4817_s4 }
  0x96   : > { %p4821_p3 = pneg %p4820_p1  ;;  %p4827_p9 = por %p4826_p2, %p4825_p4 }
  0x98   : > { %p4828_p10 = pnand %p4827_p9, %p4821_p3 }
  0x9a   : > { %4831 = shalt.err (!%p4828_p10)
}
  0x9b   : > { %4367 = dma.hbm_to_vmem [thread:$0]  (!%p6336_p5), %s5511_s20, 16, %s5514_s15, %s6288_s10  }
  0x9c   : > { %s4062_s3 = sshll.u32 %s5208_s29, 6  ;;  %s6338_s13 = sld [smem:[#allocation54_spill]] }
  0x9d   : > { %s687_s4 = scalar_lea.vmem [#allocation18], %s3892_s7  ;;  %s6290_s14 = scalar_lea.sflag [#allocation19], %s5392_s17 }
  0x9e   : > { %s695_s1 = sshll.u32 %s687_s4, 4  ;;  %s696_s1 = int_to_ptr.vmem [resolvable:$true] %s695_s1 }
  0xa2   : > { %s5545_s28 = scalar_lea.hbm %s6338_s13, %s4062_s3  ;;  %s4837_s6 = scalar_lea.hbm %s6338_s13, 128 }
  0xa3   : > { %s4832_s8 = scalar_lea.hbm %s5545_s28, 64  ;;  %p4838_p13 = scmp.lt.u32.totalorder %s5545_s28, %s6338_s13 }
  0xa4   : > { %p4833_p7 = scmp.ne.s32.totalorder %s5545_s28, %s4832_s8  ;;  %p4839_p0 = scmp.lt.u32.totalorder %s4837_s6, %s4832_s8 }
  0xa5   : > { %p4841_p1 = scmp.lt.u32.totalorder %s4832_s8, %s5545_s28 }
  0xa6   : > { %p4835_p8 = pnand %p4833_p7, %p5420_p6  ;;  %p4840_p12 = por %p4839_p0, %p4838_p13 }
  0xa8   : > { %p4836_p11 = pneg %p4835_p8  ;;  %p4842_p3 = por %p4841_p1, %p4840_p12 }
  0xaa   : > { %p4843_p4 = pnand %p4842_p3, %p4836_p11 }
  0xac   : > { %4846 = shalt.err (!%p4843_p4)
}
  0xad   : > { %s4847_s7 = scalar_lea.vmem %s696_s1, 64  ;;  %s5224_s4 = smov [#allocation18]  }
  0xae   : > { %p4848_p2 = scmp.ne.s32.totalorder %s696_s1, %s4847_s7  ;;  %s4852_s10 = sshll.u32 %s5224_s4, 4  ;;  %s4853_s10 = int_to_ptr.vmem [resolvable:$false] %s4852_s10 }
  0xaf   : > { %s4854_s20 = scalar_lea.vmem %s4853_s10, 128  ;;  %p4855_p7 = scmp.lt.s32.totalorder %s696_s1, %s4853_s10 }
  0xb0   : > { %p4850_p9 = pnand %p4848_p2, %p5420_p6  ;;  %p4856_p8 = scmp.lt.s32.totalorder %s4854_s20, %s4847_s7 }
  0xb2   : > { %p4851_p10 = pneg %p4850_p9  ;;  %p4857_p5 = por %p4856_p8, %p4855_p7 }
  0xb4   : > { %p4858_p0 = pnand %p4857_p5, %p4851_p10 }
  0xb6   : > { %4861 = shalt.err (!%p4858_p0)
}
  0xb7   : > { %p6339_p13 = scmp.ne.s32.totalorder %s6331_s27, 0  ;;  %s5570_s8 = sadd.s32 4294967295, %s5216_s0  }
  0xb8   : > { %s3878_s10 = sadd.s32 4294967294, %s5216_s0   ;;  %s57_s15 = sadd.s32 1, %s5208_s29 }
  0xb9   : > { %4373 = dma.hbm_to_vmem [thread:$0]  (!%p6339_p13), %s5545_s28, 64, %s696_s1, %s6290_s14  }
  0xba   : > { %p58_p5 = scmp.ge.s32.totalorder %s57_s15, 2  ;;  %s60_s6 = sadd.s32 1, %s5212_s30 }
  0xbb   : > { %s156_s3 = sadd.s32 1, %s5196_s26  ;;  %p169_p11 = scmp.ne.s32.totalorder %s5192_s25, %s5188_s24 }
  0xbc   : > { %s6403_s15 = smov (%p58_p5, %s57_s15), 0  ;;  %s6405_s6 = smov (!%p58_p5, %s60_s6), %s5212_s30 }
  0xbd   : > { %6340 = sst [smem:[#allocation37_spill]] %s6403_s15  ;;  %s153_s28 = ssub.s32 %s5208_s29, %s6403_s15 }
  0xbe   : > { %p6295_p12 = scmp.eq.s32.totalorder %s5570_s8, 0  ;;  %p62_p1 = scmp.ge.s32.totalorder %s6405_s6, 2 }
  0xbf   : > { %p154_p3 = scmp.eq.s32.totalorder %s153_s28, 0  ;;  %s468_s12 = sadd.s32 1, %s5184_s23 }
  0xc0   : > { %p5586_p4 = por %p6295_p12, %p169_p11  ;;  %s6407_s6 = smov (%p62_p1, %s6405_s6), 0 }
  0xc1   : > { %6342 = sst [smem:[#allocation38_spill]] %s6407_s6  ;;  %s465_s7 = ssub.s32 %s5212_s30, %s6407_s6 }
  0xc2   : > { %s6341_s1 = scalar_select %p5586_p4, 1, 0 }
  0xc3   : > { %s5594_s24 = scalar_select %p154_p3, %s5196_s26, %s156_s3  }
  0xc4   : > { %p478_p2 = scmp.ne.s32.totalorder %s5184_s23, %s5180_s22  ;;  %p466_p9 = scmp.eq.s32.totalorder %s465_s7, 0 }
  0xc5   : > { %6343 = sst [smem:[#allocation39_spill]] %s5594_s24  ;;  %p479_p10 = scmp.eq.s32.totalorder %s5570_s8, 3 }
  0xc6   : > { %p484_p7 = scmp.ne.s32.totalorder %s5180_s22, %s5176_s21  ;;  %p485_p8 = scmp.eq.s32.totalorder %s3878_s10, 3 }
  0xc7   : > { %s5604_s4 = scalar_select %p466_p9, %s5184_s23, %s468_s12  }
  0xc8   : > { %p5606_p0 = por %p479_p10, %p478_p2  ;;  %p5610_p5 = por %p485_p8, %p484_p7 }
  0xc9   : > { %6344 = sst [smem:[#allocation40_spill]] %s5604_s4  ;;  %p3879_p11 = scmp.ge.s32.totalorder %s5216_s0, 1 }
  0xca   : > { %s6345_s20 = scalar_select %p5606_p0, 1, 0 }
  0xcb   : > { %s6346_s28 = scalar_select %p5610_p5, 1, 0 }
  0xcc   : > { %p492_p1 = scmp.lt.s32.totalorder %s5216_s0, 5  ;;  %s5225_s7 = smov [#allocation3]  }
  0xcd   : > { %s508_s10 = sshll.u32 %s5225_s7, 4  ;;  %s6348_s5 = sld [smem:[#allocation46_spill]]  ;;  %s5620_s10 = int_to_ptr.vmem [resolvable:$true] %s508_s10 }
  0xce   : > { %p5616_p3 = pnand %p3879_p11, %p492_p1  ;;  %s549_s9 = scalar_lea.vmem [#allocation8], %s5395_s18 }
  0xcf   : > { %s556_s11 = sshll.u32 %s549_s9, 4  ;;  %s557_s11 = int_to_ptr.vmem [resolvable:$true] %s556_s11 }
  0xd0   : > { %s6347_s3 = scalar_select %p5616_p3, 1, 0 }
  0xd1   : > { %p4342_p2 = pneg %p5616_p3 }
  0xd3   : > { %s5628_s2 = scalar_lea.hbm %s6348_s5, %s5398_s19  ;;  %p5634_p9 = pnand %p4342_p2, %p6295_p12 }
  0xd4   : > { %s4862_s7 = scalar_lea.hbm %s5628_s2, 16  ;;  %s4867_s15 = scalar_lea.hbm %s6348_s5, 32 }
  0xd5   : > { %s6349_s6 = scalar_select %p5634_p9, 1, 0 }
  0xd6   : > { %p4863_p10 = scmp.ne.s32.totalorder %s5628_s2, %s4862_s7  ;;  %p4868_p11 = scmp.lt.u32.totalorder %s5628_s2, %s6348_s5 }
  0xd7   : > { %p4869_p1 = scmp.lt.u32.totalorder %s4867_s15, %s4862_s7  ;;  %p4871_p2 = scmp.lt.u32.totalorder %s4862_s7, %s5628_s2 }
  0xd8   : > { %p4865_p7 = pnand %p4863_p10, %p5420_p6 }
  0xd9   : > { %p4870_p5 = por %p4869_p1, %p4868_p11 }
  0xda   : > { %p4866_p8 = pneg %p4865_p7 }
  0xdb   : > { %p4872_p12 = por %p4871_p2, %p4870_p5 }
  0xdd   : > { %p4873_p0 = pnand %p4872_p12, %p4866_p8 }
  0xdf   : > { %4876 = shalt.err (!%p4873_p0)
}
  0xe0   : > { %s4877_s9 = scalar_lea.vmem %s557_s11, 16  ;;  %s5226_s13 = smov [#allocation8]  }
  0xe1   : > { %p4878_p4 = scmp.ne.s32.totalorder %s557_s11, %s4877_s9  ;;  %s4882_s26 = sshll.u32 %s5226_s13, 4  ;;  %s4883_s26 = int_to_ptr.vmem [resolvable:$false] %s4882_s26 }
  0xe2   : > { %s4884_s14 = scalar_lea.vmem %s4883_s26, 32  ;;  %p4885_p3 = scmp.lt.s32.totalorder %s557_s11, %s4883_s26 }
  0xe3   : > { %p4880_p10 = pnand %p4878_p4, %p5420_p6  ;;  %p4886_p9 = scmp.lt.s32.totalorder %s4884_s14, %s4877_s9 }
  0xe5   : > { %p4881_p7 = pneg %p4880_p10  ;;  %p4887_p13 = por %p4886_p9, %p4885_p3 }
  0xe7   : > { %p4888_p1 = pnand %p4887_p13, %p4881_p7 }
  0xe9   : > { %4891 = shalt.err (!%p4888_p1)
}
  0xea   : > { %p6350_p11 = scmp.ne.s32.totalorder %s6331_s27, 0  ;;  %s6351_s30 = scalar_lea.sflag [#allocation7], %s5392_s17 }
  0xeb   : > { %s6352_s7 = sld [smem:[#allocation43_spill]]  ;;  %p6353_p4 = scmp.ne.s32.totalorder %s6349_s6, 0 }
  0xec   : > { %4352 = dma.hbm_to_vmem [thread:$0]  (!%p6350_p11), %s5628_s2, 16, %s557_s11, %s6351_s30  }
  0xed   : > { %p4894_p0 = pneg %p6353_p4 }
  0xf1   : > { %s4892_s12 = scalar_lea.hbm %s6352_s7, 16 }
  0xf2   : > { %p4893_p12 = scmp.ne.s32.totalorder %s6352_s7, %s4892_s12  ;;  %p4899_p3 = scmp.lt.u32.totalorder %s4892_s12, %s6352_s7 }
  0xf4   : > { %p4895_p5 = pnand %p4894_p0, %p4893_p12 }
  0xf6   : > { %p4896_p13 = pneg %p4895_p5 }
  0xf8   : > { %p4901_p9 = pnand %p4899_p3, %p4896_p13 }
  0xfa   : > { %4904 = shalt.err (!%p4901_p9)
}
  0xfb   : > { %s4905_s11 = scalar_lea.vmem %s5620_s10, 16  ;;  %s4912_s5 = scalar_lea.vmem %s5620_s10, 32 }
  0xfc   : > { %p4906_p8 = scmp.ne.s32.totalorder %s5620_s10, %s4905_s11  ;;  %p4913_p7 = scmp.lt.s32.totalorder %s5620_s10, %s5620_s10 }
  0xfd   : > { %p4914_p1 = scmp.lt.s32.totalorder %s4912_s5, %s4905_s11 }
  0xfe   : > { %p4908_p2 = pnand %p4906_p8, %p4894_p0 }
  0xff   : > { %p4915_p12 = por %p4914_p1, %p4913_p7 }
 0x100   : > { %p4909_p10 = pneg %p4908_p2 }
 0x102   : > { %p4916_p5 = pnand %p4915_p12, %p4909_p10 }
 0x104   : > { %4919 = shalt.err (!%p4916_p5)
}
 0x105   : > { %4345 = dma.hbm_to_vmem [thread:$0]  (!%p6353_p4), %s6352_s7, 16, %s5620_s10, [#allocation4]  }
 0x106   : > { %s4311_s30 = smul.u32 48, %s5208_s29  ;;  %s6355_s9 = sld [smem:[#allocation48_spill]] }
 0x107   : > { %s6354_s15 = smul.u32 3, %s5395_s18  ;;  %s6356_s4 = sld [smem:[#allocation51_spill]] }
 0x109   : > { %s588_s24 = scalar_lea.vmem [#allocation11], %s6354_s15 }
 0x10a   : > { %s596_s12 = sshll.u32 %s588_s24, 4  ;;  %s5682_s12 = int_to_ptr.vmem [resolvable:$true] %s596_s12 }
 0x10c   : > { %s594_s11 = scalar_lea.hbm %s6355_s9, %s4311_s30  ;;  %s4925_s15 = scalar_lea.hbm %s6355_s9, 96 }
 0x10d   : > { %s5691_s23 = scalar_lea.hbm %s6356_s4, %s5398_s19  ;;  %s4920_s2 = scalar_lea.hbm %s594_s11, 48 }
 0x10e   : > { %p4921_p0 = scmp.ne.s32.totalorder %s594_s11, %s4920_s2  ;;  %p4926_p3 = scmp.lt.u32.totalorder %s594_s11, %s6355_s9 }
 0x10f   : > { %p4927_p9 = scmp.lt.u32.totalorder %s4925_s15, %s4920_s2  ;;  %p4929_p2 = scmp.lt.u32.totalorder %s4920_s2, %s594_s11 }
 0x110   : > { %p4923_p13 = pnand %p4921_p0, %p5420_p6 }
 0x111   : > { %p4928_p8 = por %p4927_p9, %p4926_p3 }
 0x112   : > { %p4924_p4 = pneg %p4923_p13 }
 0x113   : > { %p4930_p10 = por %p4929_p2, %p4928_p8 }
 0x115   : > { %p4931_p7 = pnand %p4930_p10, %p4924_p4 }
 0x117   : > { %4934 = shalt.err (!%p4931_p7)
}
 0x118   : > { %s4935_s30 = scalar_lea.vmem %s5682_s12, 48  ;;  %s5227_s13 = smov [#allocation11]  }
 0x119   : > { %p4936_p1 = scmp.ne.s32.totalorder %s5682_s12, %s4935_s30  ;;  %s4940_s26 = sshll.u32 %s5227_s13, 4  ;;  %s4941_s26 = int_to_ptr.vmem [resolvable:$false] %s4940_s26 }
 0x11a   : > { %s4942_s7 = scalar_lea.vmem %s4941_s26, 96  ;;  %p4943_p0 = scmp.lt.s32.totalorder %s5682_s12, %s4941_s26 }
 0x11b   : > { %p4938_p12 = pnand %p4936_p1, %p5420_p6  ;;  %p4944_p13 = scmp.lt.s32.totalorder %s4942_s7, %s4935_s30 }
 0x11d   : > { %p4939_p5 = pneg %p4938_p12  ;;  %p4945_p3 = por %p4944_p13, %p4943_p0 }
 0x11f   : > { %p4946_p9 = pnand %p4945_p3, %p4939_p5 }
 0x121   : > { %4949 = shalt.err (!%p4946_p9)
}
 0x122   : > { %s6357_s6 = scalar_lea.sflag [#allocation10], %s5392_s17  ;;  %s631_s5 = scalar_lea.vmem [#allocation14], %s5395_s18 }
 0x123   : > { %4358 = dma.hbm_to_vmem [thread:$0]  (!%p6350_p11), %s594_s11, 48, %s5682_s12, %s6357_s6  }
 0x124   : > { %s638_s2 = sshll.u32 %s631_s5, 4  ;;  %s3889_s10 = sshll.u32 %s5395_s18, 8  ;;  %s639_s2 = int_to_ptr.vmem [resolvable:$true] %s638_s2 }
 0x125   : > { %s4950_s14 = scalar_lea.hbm %s5691_s23, 16  ;;  %s4955_s30 = scalar_lea.hbm %s6356_s4, 32 }
 0x126   : > { %p4951_p4 = scmp.ne.s32.totalorder %s5691_s23, %s4950_s14  ;;  %p4956_p10 = scmp.lt.u32.totalorder %s5691_s23, %s6356_s4 }
 0x127   : > { %p4957_p7 = scmp.lt.u32.totalorder %s4955_s30, %s4950_s14  ;;  %p4959_p12 = scmp.lt.u32.totalorder %s4950_s14, %s5691_s23 }
 0x128   : > { %p4953_p8 = pnand %p4951_p4, %p5420_p6 }
 0x129   : > { %p4958_p1 = por %p4957_p7, %p4956_p10 }
 0x12a   : > { %p4954_p2 = pneg %p4953_p8 }
 0x12b   : > { %p4960_p5 = por %p4959_p12, %p4958_p1 }
 0x12d   : > { %p4961_p0 = pnand %p4960_p5, %p4954_p2 }
 0x12f   : > { %4964 = shalt.err (!%p4961_p0)
}
 0x130   : > { %s4965_s12 = scalar_lea.vmem %s639_s2, 16  ;;  %s5228_s11 = smov [#allocation14]  }
 0x131   : > { %p4966_p13 = scmp.ne.s32.totalorder %s639_s2, %s4965_s12  ;;  %s4970_s7 = sshll.u32 %s5228_s11, 4  ;;  %s4971_s7 = int_to_ptr.vmem [resolvable:$false] %s4970_s7 }
 0x132   : > { %s4972_s6 = scalar_lea.vmem %s4971_s7, 32  ;;  %p4973_p4 = scmp.lt.s32.totalorder %s639_s2, %s4971_s7 }
 0x133   : > { %p4968_p3 = pnand %p4966_p13, %p5420_p6  ;;  %p4974_p8 = scmp.lt.s32.totalorder %s4972_s6, %s4965_s12 }
 0x135   : > { %p4969_p9 = pneg %p4968_p3  ;;  %p4975_p11 = por %p4974_p8, %p4973_p4 }
 0x137   : > { %p4976_p7 = pnand %p4975_p11, %p4969_p9 }
 0x139   : > { %4979 = shalt.err (!%p4976_p7)
}
 0x13a   : > { %p6358_p10 = scmp.ne.s32.totalorder %s6331_s27, 0  ;;  %s6359_s5 = scalar_lea.sflag [#allocation13], %s5392_s17 }
 0x13b   : > { %s4061_s14 = sshll.u32 %s5208_s29, 12  ;;  %s666_s15 = scalar_lea.vmem [#allocation17], %s3889_s10 }
 0x13c   : > { %4364 = dma.hbm_to_vmem [thread:$0]  (!%p6358_p10), %s5691_s23, 16, %s639_s2, %s6359_s5  }
 0x13d   : > { %s673_s24 = sshll.u32 %s666_s15, 4  ;;  %s6360_s26 = sld [smem:[#allocation53_spill]]  ;;  %s5742_s24 = int_to_ptr.vmem [resolvable:$true] %s673_s24 }
 0x143   : > { %s6361_s12 = smov %s6360_s26  ;;  %s5740_s11 = scalar_lea.hbm %s6360_s26, %s4061_s14 }
 0x144   : > { %s4980_s7 = scalar_lea.hbm %s5740_s11, 4096  ;;  %s4985_s6 = scalar_lea.hbm %s6361_s12, 8192 }
 0x145   : > { %p4981_p11 = scmp.ne.s32.totalorder %s5740_s11, %s4980_s7  ;;  %p4986_p12 = scmp.lt.u32.totalorder %s5740_s11, %s6361_s12 }
 0x146   : > { %p4987_p5 = scmp.lt.u32.totalorder %s4985_s6, %s4980_s7  ;;  %p4989_p13 = scmp.lt.u32.totalorder %s4980_s7, %s5740_s11 }
 0x147   : > { %p4983_p2 = pnand %p4981_p11, %p5420_p6 }
 0x148   : > { %p4988_p0 = por %p4987_p5, %p4986_p12 }
 0x149   : > { %p4984_p1 = pneg %p4983_p2 }
 0x14a   : > { %p4990_p3 = por %p4989_p13, %p4988_p0 }
 0x14c   : > { %p4991_p9 = pnand %p4990_p3, %p4984_p1 }
 0x14e   : > { %4994 = shalt.err (!%p4991_p9)
}
 0x14f   : > { %s4995_s30 = scalar_lea.vmem %s5742_s24, 4096  ;;  %s5229_s13 = smov [#allocation17]  }
 0x150   : > { %p4996_p4 = scmp.ne.s32.totalorder %s5742_s24, %s4995_s30  ;;  %s5000_s26 = sshll.u32 %s5229_s13, 4  ;;  %s5001_s26 = int_to_ptr.vmem [resolvable:$false] %s5000_s26 }
 0x151   : > { %s5002_s23 = scalar_lea.vmem %s5001_s26, 8192  ;;  %p5003_p11 = scmp.lt.s32.totalorder %s5742_s24, %s5001_s26 }
 0x152   : > { %p4998_p8 = pnand %p4996_p4, %p5420_p6  ;;  %p5004_p2 = scmp.lt.s32.totalorder %s5002_s23, %s4995_s30 }
 0x154   : > { %p4999_p7 = pneg %p4998_p8  ;;  %p5005_p12 = por %p5004_p2, %p5003_p11 }
 0x156   : > { %p5006_p5 = pnand %p5005_p12, %p4999_p7 }
 0x158   : > { %5009 = shalt.err (!%p5006_p5)
}
 0x159   : > { %s5230_s7 = smov 256   ;;  %s5231_s2 = smov 16  }
 0x15a   : > { %s6362_s6 = scalar_lea.sflag [#allocation16], %s5392_s17  ;;  %s6363_s13 = sld [smem:[#allocation55_spill]] }
 0x15b   : > { %4370 = dma.hbm_to_vmem [thread:$0]  (!%p6358_p10), %s5740_s11, 4096, %s5742_s24, %s6362_s6, %s5230_s7, %s5230_s7, %s5231_s2  }
 0x15c   : > { %s706_s26 = scalar_lea.vmem [#allocation20], %s3889_s10 }
 0x15d   : > { %s713_s23 = sshll.u32 %s706_s26, 4  ;;  %s5776_s23 = int_to_ptr.vmem [resolvable:$true] %s713_s23 }
 0x160   : > { %s5772_s30 = scalar_lea.hbm %s6363_s13, %s4061_s14  ;;  %s5015_s7 = scalar_lea.hbm %s6363_s13, 8192 }
 0x161   : > { %s5010_s4 = scalar_lea.hbm %s5772_s30, 4096  ;;  %p5016_p3 = scmp.lt.u32.totalorder %s5772_s30, %s6363_s13 }
 0x162   : > { %p5011_p1 = scmp.ne.s32.totalorder %s5772_s30, %s5010_s4  ;;  %p5017_p9 = scmp.lt.u32.totalorder %s5015_s7, %s5010_s4 }
 0x163   : > { %p5019_p8 = scmp.lt.u32.totalorder %s5010_s4, %s5772_s30 }
 0x164   : > { %p5013_p0 = pnand %p5011_p1, %p5420_p6  ;;  %p5018_p4 = por %p5017_p9, %p5016_p3 }
 0x166   : > { %p5014_p13 = pneg %p5013_p0  ;;  %p5020_p7 = por %p5019_p8, %p5018_p4 }
 0x168   : > { %p5021_p11 = pnand %p5020_p7, %p5014_p13 }
 0x16a   : > { %5024 = shalt.err (!%p5021_p11)
}
 0x16b   : > { %s5025_s10 = scalar_lea.vmem %s5776_s23, 4096  ;;  %s5232_s6 = smov [#allocation20]  }
 0x16c   : > { %p5026_p2 = scmp.ne.s32.totalorder %s5776_s23, %s5025_s10  ;;  %s5030_s5 = sshll.u32 %s5232_s6, 4  ;;  %s5031_s5 = int_to_ptr.vmem [resolvable:$false] %s5030_s5 }
 0x16d   : > { %s5032_s15 = scalar_lea.vmem %s5031_s5, 8192  ;;  %p5033_p1 = scmp.lt.s32.totalorder %s5776_s23, %s5031_s5 }
 0x16e   : > { %p5028_p12 = pnand %p5026_p2, %p5420_p6  ;;  %p5034_p0 = scmp.lt.s32.totalorder %s5032_s15, %s5025_s10 }
 0x170   : > { %p5029_p5 = pneg %p5028_p12  ;;  %p5035_p3 = por %p5034_p0, %p5033_p1 }
 0x172   : > { %p5036_p9 = pnand %p5035_p3, %p5029_p5 }
 0x174   : > { %5039 = shalt.err (!%p5036_p9)
}
 0x175   : > { %s5233_s4 = smov 64   ;;  %s5234_s26 = smov 4  }
 0x176   : > { %s6364_s24 = scalar_lea.sflag [#allocation19], %s5392_s17  ;;  %s6365_s14 = sld [smem:[#allocation56_spill]] }
 0x177   : > { %4376 = dma.hbm_to_vmem [thread:$0]  (!%p6358_p10), %s5772_s30, 4096, %s5776_s23, %s6364_s24, %s5233_s4, %s5233_s4, %s5234_s26  }
 0x178   : > { %s726_s10 = scalar_lea.vmem [#allocation21], %s5395_s18  ;;  %s724_s5 = scalar_lea.sflag [#allocation22], %s5395_s18 }
 0x179   : > { %s733_s6 = sshll.u32 %s726_s10, 4  ;;  %s734_s6 = int_to_ptr.vmem [resolvable:$true] %s733_s6 }
 0x17c   : > { %s5805_s2 = scalar_lea.hbm %s6365_s14, %s5398_s19  ;;  %s5045_s23 = scalar_lea.hbm %s6365_s14, 32 }
 0x17d   : > { %s5040_s15 = scalar_lea.hbm %s5805_s2, 16  ;;  %p5046_p7 = scmp.lt.u32.totalorder %s5805_s2, %s6365_s14 }
 0x17e   : > { %p5041_p13 = scmp.ne.s32.totalorder %s5805_s2, %s5040_s15  ;;  %p5047_p11 = scmp.lt.u32.totalorder %s5045_s23, %s5040_s15 }
 0x17f   : > { %p5049_p12 = scmp.lt.u32.totalorder %s5040_s15, %s5805_s2 }
 0x180   : > { %p5043_p4 = pnand %p5041_p13, %p5420_p6  ;;  %p5048_p2 = por %p5047_p11, %p5046_p7 }
 0x182   : > { %p5044_p8 = pneg %p5043_p4  ;;  %p5050_p5 = por %p5049_p12, %p5048_p2 }
 0x184   : > { %p5051_p1 = pnand %p5050_p5, %p5044_p8 }
 0x186   : > { %5054 = shalt.err (!%p5051_p1)
}
 0x187   : > { %s5055_s18 = scalar_lea.vmem %s734_s6, 16  ;;  %s5235_s26 = smov [#allocation21]  }
 0x188   : > { %p5056_p0 = scmp.ne.s32.totalorder %s734_s6, %s5055_s18  ;;  %s5060_s24 = sshll.u32 %s5235_s26, 4  ;;  %s5061_s24 = int_to_ptr.vmem [resolvable:$false] %s5060_s24 }
 0x189   : > { %s5062_s11 = scalar_lea.vmem %s5061_s24, 32  ;;  %p5063_p13 = scmp.lt.s32.totalorder %s734_s6, %s5061_s24 }
 0x18a   : > { %p5058_p3 = pnand %p5056_p0, %p5420_p6  ;;  %p5064_p4 = scmp.lt.s32.totalorder %s5062_s11, %s5055_s18 }
 0x18c   : > { %p5059_p9 = pneg %p5058_p3  ;;  %p5065_p10 = por %p5064_p4, %p5063_p13 }
 0x18e   : > { %p5066_p7 = pnand %p5065_p10, %p5059_p9 }
 0x190   : > { %5069 = shalt.err (!%p5066_p7)
}
 0x191   : > { %p6366_p11 = scmp.ne.s32.totalorder %s6331_s27, 0  ;;  %p6367_p8 = scmp.ne.s32.totalorder %s6347_s3, 0 }
 0x192   : > { %p6368_p2 = scmp.eq.s32.totalorder (!%p6367_p8), %s5570_s8, 0 }
 0x193   : > { %4379 = dma.hbm_to_vmem [thread:$0]  (!%p6366_p11), %s5805_s2, 16, %s734_s6, %s724_s5  }
 0x194   : > { %742 = sbr.rel (%p6367_p8) target bundleno = 3866 (0xf1a), region = 84 }
 0x19b   : > { %5143 = dma.done.wait (%p6368_p2), [#allocation4], 16   ;;  %p6369_p6 = pmov %p6368_p2 }
 0x19c   : > { %s5833_s16 = sand.u32 1, %s5570_s8   ;;  %s5836_s7 = sand.u32 1, %s5192_s25  }
 0x19d   : > { %5145 = vsyncadd (%p6369_p6), [#allocation4], 4294967280  ;;  %s749_s27 = scalar_lea.sflag [#allocation7], %s5833_s16  ;;  %p6370_p10 = scmp.ne.s32.totalorder %s6341_s1, 0 }
 0x19f   : > { %5147 = dma.done.wait (%p6370_p10), %s749_s27, 32  }
 0x1a0   : > { %5149 = vsyncadd (%p6370_p10), %s749_s27, 4294967264  ;;  %s4312_s3 = smul.u32 192, %s5836_s7  ;;  %s765_s6 = scalar_lea.sflag [#allocation10], %s5833_s16 }
 0x1a2   : > { %s5847_s8 = scalar_lea.vmem [#allocation9], %s4312_s3 }
 0x1a3   : > { %5151 = dma.done.wait (%p6370_p10), %s765_s6, 3120  }
 0x1a4   : > { %5153 = vsyncadd (%p6370_p10), %s765_s6, 4294964176  ;;  %s4313_s5 = smul.u32 3, %s5836_s7  ;;  %s783_s17 = scalar_lea.sflag [#allocation13], %s5833_s16 }
 0x1a6   : > { %s5854_s15 = scalar_lea.vmem [#allocation11], %s4313_s5 }
 0x1a7   : > { %5155 = dma.done.wait (%p6370_p10), %s783_s17, 32  }
 0x1a8   : > { %5157 = vsyncadd (%p6370_p10), %s783_s17, 4294967264  ;;  %s799_s4 = scalar_lea.sflag [#allocation16], %s5833_s16 }
 0x1a9   : > { %5159 = dma.done.wait (%p6370_p10), %s799_s4, 4112  }
 0x1aa   : > { %5161 = vsyncadd (%p6370_p10), %s799_s4, 4294963184  ;;  %s3901_s18 = sshll.u32 %s5836_s7, 8  ;;  %s3902_s26 = sshll.u32 %s5836_s7, 2 }
 0x1ab   : > { %s5871_s24 = scalar_lea.vmem [#allocation17], %s3901_s18  ;;  %s816_s11 = scalar_lea.sflag [#allocation19], %s5833_s16 }
 0x1ac   : > { %s5874_s27 = scalar_lea.vmem [#allocation18], %s3902_s26 }
 0x1ad   : > { %5163 = dma.done.wait (%p6370_p10), %s816_s11, 4160  }
 0x1ae   : > { %5165 = vsyncadd (%p6370_p10), %s816_s11, 4294963136  ;;  %s5880_s3 = scalar_lea.vmem [#allocation20], %s3901_s18  ;;  %s834_s6 = scalar_lea.sflag [#allocation22], %s5836_s7 }
 0x1af   : > { %5167 = dma.done.wait (%p6370_p10), %s834_s6, 16  }
 0x1b0   : > { %5169 = vsyncadd (%p6370_p10), %s834_s6, 4294967280  ;;  %s6371_s16 = sld [smem:[#allocation35_spill]]  ;;  %s6372_s17 = sld [smem:[#allocation34_spill]] }
 0x1b1   : > { %s935_s4 = sand.u32 1, %s5180_s22   ;;  %s6373_s23 = sld [smem:[#allocation41_spill]] }
 0x1b2   : > { %s3904_s26 = sshll.u32 %s935_s4, 4  ;;  %s6374_s2 = sld [smem:[#allocation49_spill]] }
 0x1b3   : > { %s5903_s12 = scalar_lea.vmem [#allocation23], %s3904_s26 }
 0x1b6   : > { %p938_p12 = scmp.lt.s32.totalorder %s6371_s16, 1  ;;  %p942_p5 = scmp.lt.s32.totalorder %s6372_s17, 1 }
 0x1b7   : > { %p3908_p1 = scmp.ne.s32.totalorder %s6372_s17, 0 }
 0x1b8   : > { %s6409_s16 = smov (!%p938_p12, %s6371_s16), 1 }
 0x1b9   : > { %s943_s18 = scalar_select %p942_p5, %s6372_s17, 1 }
 0x1ba   : > { %s3905_s11 = sshll.u32 %s6409_s16, 3  ;;  %951 = sbr.rel (%p3908_p1) target bundleno = 449 (0x1c1), region = 136 }
 0x1bb   : > { %s941_s30 = scalar_lea.vmem %s6373_s23, %s3905_s11  ;;  %s4064_s1 = sshll.u32 %s943_s18, 6 }
 0x1bc   : > { %s5901_s9 = scalar_lea.vmem %s6374_s2, %s4064_s1  ;;  %v952_v0 = vld [vmem:[%s941_s30] sm:$0xff] (!%p3908_p1) }
 0x1bd   : > { %953 = vst [vmem:[#allocation2] sm:$0xff] (!%p3908_p1), %v952_v0 }
 0x1c1 PF: > { %v4537_v2 = vld [vmem:[%s5847_s8 + $0x4] ss:$12 sps:$4 sm:$0xff]   ;;  %v4539_v3 = vld [vmem:[%s5847_s8] ss:$12 sps:$4 sm:$0xff]   ;;  %v5236_v4 = vmov 0.0   ;;  %v5237_v26 = vmov 0   ;;  %v1018_v42 = vlaneseq }
 0x1c2   : > { %4168 = vmatprep.subr.bf16.mxu1 %v5236_v4  ;;  %v4540_v5 = vld [vmem:[%s5847_s8 + $0x8] ss:$12 sps:$4 sm:$0xff]   ;;  %v4543_v7 = vld [vmem:[%s5847_s8 + $0x18] ss:$12 sps:$4 sm:$0xff]   ;;  %1161 = vmatprep.subr.bf16.mxu0 %v4537_v2  ;;  %v4544_v8 = vld [vmem:[%s5847_s8 + $0x20] ss:$12 sps:$4 sm:$0xff]  }
 0x1c3   : > { %v4541_v6 = vld [vmem:[%s5847_s8 + $0x1c] ss:$12 sps:$4 sm:$0xff]   ;;  %v4545_v9 = vld [vmem:[%s5847_s8 + $0x34] ss:$12 sps:$4 sm:$0xff]   ;;  %1162 = vmatpush1.bf16.msra.mxu0 %v4539_v3  ;;  %4169 = vmatpush3.bf16.msra.mxu1 %v4540_v5  ;;  %v4548_v15 = vld [vmem:[%s5847_s8 + $0x38] ss:$12 sps:$4 sm:$0xff]  }
 0x1c4   : > { %v954_v1 = vld [vmem:[#allocation2] sm:$0xff]  ;;  %1163 = vmatprep.subr.bf16.mxu0 %v4541_v6  ;;  %4170 = vmatprep.subr.bf16.mxu1 %v5236_v4  ;;  %v4555_v20 = vld [vmem:[%s5847_s8 + $0x60] ss:$12 sps:$4 sm:$0xff]   ;;  %v4557_v22 = vld [vmem:[%s5847_s8 + $0x7c] ss:$12 sps:$4 sm:$0xff]   ;;  %vm5238_vm0 = vmmov 0  }
 0x1c5   : > { %957 = vadd.xlane.f32.xlu0 %v954_v1  ;;  %v4547_v14 = vld [vmem:[%s5847_s8 + $0x30] ss:$12 sps:$4 sm:$0xff]   ;;  %v4549_v16 = vld [vmem:[%s5847_s8 + $0x4c] ss:$12 sps:$4 sm:$0xff]   ;;  %v4551_v17 = vld [vmem:[%s5847_s8 + $0x48] ss:$12 sps:$4 sm:$0xff]   ;;  %1193 = vmatprep.mubr.bf16.mxu0 %v5237_v26 }
 0x1c6   : > { %v4552_v18 = vld [vmem:[%s5847_s8 + $0x50] ss:$12 sps:$4 sm:$0xff]   ;;  %v4556_v21 = vld [vmem:[%s5847_s8 + $0x68] ss:$12 sps:$4 sm:$0xff]   ;;  %v4559_v23 = vld [vmem:[%s5847_s8 + $0x78] ss:$12 sps:$4 sm:$0xff]   ;;  %4184 = vmatprep.mubr.msk.bf16.mxu1 %vm5238_vm0, %v5236_v4 }
 0x1c7   : > { %1164 = vmatpush1.bf16.msra.mxu0 %v4543_v7  ;;  %4171 = vmatpush3.bf16.msra.mxu1 %v4544_v8  ;;  %v4553_v19 = vld [vmem:[%s5847_s8 + $0x64] ss:$12 sps:$4 sm:$0xff]   ;;  %v4560_v24 = vld [vmem:[%s5847_s8 + $0x80] ss:$12 sps:$4 sm:$0xff]   ;;  %v4567_v30 = vld [vmem:[%s5847_s8 + $0xa8] ss:$12 sps:$4 sm:$0xff]  }
 0x1c8   : > { %1165 = vmatprep.subr.bf16.mxu0 %v4545_v9  ;;  %4172 = vmatprep.subr.bf16.mxu1 %v5236_v4  ;;  %v4561_v25 = vld [vmem:[%s5847_s8 + $0x94] ss:$12 sps:$4 sm:$0xff]   ;;  %v4563_v27 = vld [vmem:[%s5847_s8 + $0x90] ss:$12 sps:$4 sm:$0xff]   ;;  %v4564_v28 = vld [vmem:[%s5847_s8 + $0x98] ss:$12 sps:$4 sm:$0xff]  }
 0x1c9   : > { %v4565_v29 = vld [vmem:[%s5847_s8 + $0xac] ss:$12 sps:$4 sm:$0xff]   ;;  %v4568_v31 = vld [vmem:[%s5847_s8 + $0xb0] ss:$12 sps:$4 sm:$0xff]   ;;  %s6375_s2 = scalar_lea.vmem [#allocation6], %s5836_s7  ;;  %s6376_s10 = scalar_lea.vmem [#allocation8], %s5836_s7 }
 0x1ca   : > { %v3909_v36 = vld [vmem:[%s6375_s2] ss:$0 sm:$0xff]  ;;  %v5950_v43 = vshrl.u32 %v1018_v42, 7  ;;  %v5954_v45 = vld [vmem:[%s5854_s15] sm:$0x7]  ;;  %s5239_s8 = smov 32  }
 0x1cb   : > { %1166 = vmatpush1.bf16.msra.mxu0 %v4547_v14  ;;  %4173 = vmatpush3.bf16.msra.mxu1 %v4548_v15  ;;  %v3910_v38 = vld [vmem:[%s6376_s10] ss:$0 sm:$0xff]  ;;  %s5240_s15 = smov 96   ;;  %s5241_s30 = smov 64   ;;  %v5242_v0 = vmov 0.0|0.0   ;;  %vm1402_vm1 = vcmask 261120  }
 0x1cc   : > { %4174 = vmatprep.subr.bf16.mxu1 %v5236_v4  ;;  %1167 = vmatprep.subr.bf16.mxu0 %v4549_v16  ;;  %v1024_v44 = vsub.s32 1, %v5950_v43  ;;  %v1020_v46 = vsub.s32 0, %v5950_v43  ;;  %vm1701_vm3 = vcmask 64512   ;;  %vm2551_vm4 = vcmask 523264   ;;  %s6378_s23 = scalar_lea.vmem [#allocation14], %s5836_s7  ;;  %s6379_s19 = scalar_lea.vmem [#allocation15], %s5836_s7 }
 0x1cd   : > { %vm2553_vm5 = vcmask 785408  }
 0x1ce   : > { %v1025_v47 = vrot.slane %v5954_v45, %v1024_v44  ;;  %v1021_v52 = vrot.slane %v5954_v45, %v1020_v46 }
 0x1cf   : > { %1168 = vmatpush1.bf16.msra.mxu0 %v4551_v17  ;;  %4175 = vmatpush3.bf16.msra.mxu1 %v4552_v18 }
 0x1d0   : > { %4176 = vmatprep.subr.bf16.mxu1 %v5236_v4  ;;  %1169 = vmatprep.subr.bf16.mxu0 %v4553_v19 }
 0x1d3   : > { %1170 = vmatpush1.bf16.msra.mxu0 %v4555_v20  ;;  %4177 = vmatpush3.bf16.msra.mxu1 %v4556_v21 }
 0x1d4   : > { %1171 = vmatprep.subr.bf16.mxu0 %v4557_v22  ;;  %4178 = vmatprep.subr.bf16.mxu1 %v5236_v4 }
 0x1d7   : > { %1172 = vmatpush1.bf16.msra.mxu0 %v4559_v23  ;;  %4179 = vmatpush3.bf16.msra.mxu1 %v4560_v24 }
 0x1d8   : > { %1173 = vmatprep.subr.bf16.mxu0 %v4561_v25  ;;  %4180 = vmatprep.subr.bf16.mxu1 %v5236_v4 }
 0x1db   : > { %1174 = vmatpush1.bf16.msra.mxu0 %v4563_v27  ;;  %4181 = vmatpush3.bf16.msra.mxu1 %v4564_v28 }
 0x1dc   : > { %1175 = vmatprep.subr.bf16.mxu0 %v4565_v29  ;;  %4182 = vmatprep.subr.bf16.mxu1 %v5236_v4 }
 0x1df   : > { %1176 = vmatpush1.bf16.msra.mxu0 %v4567_v30  ;;  %4183 = vmatpush3.bf16.msra.mxu1 %v4568_v31 }
 0x1e0   : > { %4284 = vmatprep.subr.bf16.mxu1 %v5242_v0  ;;  %4296 = vmatprep.subr.bf16.mxu0 %v5242_v0 }
 0x252   : > { %v958_v10 = vpop.xlane.xlu0 %957 }
 0x253   : > { %v960_v11 = vmul.f32 0.0078125, %v958_v10 }
 0x255   : > { %v961_v12 = vsub.f32 %v954_v1, %v960_v11 }
 0x257   : > { %v962_v13 = vmul.f32 %v961_v12, %v961_v12 }
 0x259   : > { %963 = vadd.xlane.f32.xlu0 %v962_v13 }
 0x2e6   : > { %v964_v32 = vpop.xlane.xlu0 %963 }
 0x2e7   : > { %v965_v33 = vmul.f32 0.0078125, %v964_v32 }
 0x2e9   : > { %v966_v34 = vadd.f32 1e-05, %v965_v33 }
 0x2eb   : > { %4657 = vrsqrt.f32 %v966_v34 }
 0x2f5   : > { %v4658_v35 = vpop.eup %4657 }
 0x2f6   : > { %v968_v37 = vmul.f32 %v4658_v35, %v961_v12 }
 0x2f8   : > { %v975_v39 = vmul.f32 %v3909_v36, %v968_v37 }
 0x2fa   : > { %v982_v40 = vadd.f32 %v3910_v38, %v975_v39  ;;  %v1272_v38 = vand.u32 127, %v1018_v42 }
 0x2fc   : > { %v983_v41 = vpack.c.bf16 %v982_v40, %v982_v40  ;;  %vm1273_vm2 = vcmp.le.s32.totalorder %v1272_v38, %v5950_v43 }
 0x2fe   : > { %1194 = vmatmul.mubr.bf16.vlgmr.msra.gmra.mrb[0].mxu0 %v983_v41  ;;  %4185 = vmatmul.mubr.bf16.vlgmr.msra.gmra.mrb[0].mxu1 %v983_v41 }
 0x2ff   : > { %4196 = vmatprep.mubr.msk.f32.mxu1 %vm5238_vm0, %v5236_v4  ;;  %4218 = vmatprep.mubr.msk.f32.mxu0 %vm5238_vm0, %v5236_v4 }
 0x3d1   : > { %v1195_v48 = vpop.f32.mrb[0].mxu0  ;;  %v5960_v49 = vpop.f32.mrb[0].mxu1 }
 0x3d2   : > { %v1197_v50 = vpop.f32.mrb[1].mxu0  ;;  %v4186_v51 = vpop.f32.mrb[1].mxu1  ;;  %v1196_v58 = vadd.f32 %v1195_v48, %v1021_v52 }
 0x3d3   : > { %v1198_v53 = vadd.f32 %v1197_v50, %v1025_v47  ;;  %v1199_v54 = vpop.f32.mrb[2].mxu0  ;;  %v1239_v55 = vpop.f32.mrb[2].mxu1 }
 0x3d4   : > { %v1200_v56 = vpop.f32.mrb[3].mxu0  ;;  %v4187_v57 = vpop.f32.mrb[3].mxu1 }
 0x3d5   : > { %1256 = vrot.lane.b32.xlu0 %v1198_v53, %s5239_s8  ;;  %1250 = vrot.lane.b32.xlu1 %v1198_v53, %s5240_s15 }
 0x3d9   : > { %1253 = vrot.lane.b32.xlu1 %v1198_v53, %s5241_s30  ;;  %1245 = vrot.lane.b32.xlu0 %v1196_v58, %s5241_s30 }
 0x3dd   : > { %1247 = vrot.lane.b32.xlu0 %v1196_v58, %s5239_s8  ;;  %1243 = vrot.lane.b32.xlu1 %v1196_v58, %s5240_s15 }
 0x447   : > { %v1251_v59 = vpop.permute.xlu1 %1250  ;;  %v1257_v61 = vpop.permute.xlu0 %1256 }
 0x448   : > { %v4493_v60 = vpack.i.bf16 %v1251_v59, %v1198_v53 }
 0x44a   : > { %4494 = vxpose.xlu1.b32.start.end [1/1] (short) (narrow) %v4493_v60, 32 }
 0x44b   : > { %v1254_v62 = vpop.permute.xlu1 %1253  ;;  %v1246_v1 = vpop.permute.xlu0 %1245 }
 0x44c   : > { %v4515_v63 = vpack.i.bf16 %v1257_v61, %v1254_v62 }
 0x44e   : > { %4516 = vxpose.xlu0.b32.start.end [1/1] (short) (narrow) %v4515_v63, 32 }
 0x44f   : > { %v1244_v2 = vpop.permute.xlu1 %1243  ;;  %v1248_v3 = vpop.permute.xlu0 %1247 }
 0x4ca   : > { %v4495_v5 = vpop.trf.xlu1 }
 0x4cb   : > { %v4496_v8 = vunpack.i.l.bf16 %v4495_v5  ;;  %v4499_v25 = vunpack.i.h.bf16 %v4495_v5 }
 0x4ce   : > { %v4517_v6 = vpop.trf.xlu0  ;;  %v4500_v7 = vpop.trf.xlu1 }
 0x4cf   : > { %v4501_v9 = vunpack.i.l.bf16 %v4500_v7  ;;  %v4518_v13 = vunpack.i.l.bf16 %v4517_v6  ;;  %v4504_v20 = vunpack.i.h.bf16 %v4500_v7  ;;  %v4521_v33 = vunpack.i.h.bf16 %v4517_v6 }
 0x4d1   : > { %v4285_v12 = vpack.c.bf16 %v4501_v9, %v4496_v8  ;;  %v4291_v29 = vpack.c.bf16 %v4504_v20, %v4499_v25 }
 0x4d2   : > { %v4522_v10 = vpop.trf.xlu0  ;;  %v4505_v11 = vpop.trf.xlu1 }
 0x4d3   : > { %v4523_v14 = vunpack.i.l.bf16 %v4522_v10  ;;  %4286 = vmatpush3.bf16.msra.mxu1 %v4285_v12  ;;  %v4506_v18 = vunpack.i.l.bf16 %v4505_v11  ;;  %v4509_v30 = vunpack.i.h.bf16 %v4505_v11  ;;  %v4526_v31 = vunpack.i.h.bf16 %v4522_v10 }
 0x4d4   : > { %4287 = vmatprep.subr.bf16.mxu1 %v5242_v0 }
 0x4d5   : > { %v4297_v15 = vpack.c.bf16 %v4523_v14, %v4518_v13  ;;  %v4303_v35 = vpack.c.bf16 %v4526_v31, %v4521_v33 }
 0x4d6   : > { %v4527_v16 = vpop.trf.xlu0  ;;  %v4510_v17 = vpop.trf.xlu1 }
 0x4d7   : > { %4298 = vmatpush3.bf16.msra.mxu0 %v4297_v15  ;;  %v4511_v19 = vunpack.i.l.bf16 %v4510_v17  ;;  %v4528_v23 = vunpack.i.l.bf16 %v4527_v16  ;;  %v4514_v28 = vunpack.i.h.bf16 %v4510_v17  ;;  %v4531_v36 = vunpack.i.h.bf16 %v4527_v16 }
 0x4d8   : > { %4299 = vmatprep.subr.bf16.mxu0 %v5242_v0 }
 0x4d9   : > { %v4288_v22 = vpack.c.bf16 %v4511_v19, %v4506_v18  ;;  %v4294_v32 = vpack.c.bf16 %v4514_v28, %v4509_v30 }
 0x4da   : > { %v4532_v21 = vpop.trf.xlu0 }
 0x4db   : > { %v4533_v24 = vunpack.i.l.bf16 %v4532_v21  ;;  %4289 = vmatpush3.bf16.msra.mxu1 %v4288_v22  ;;  %v4536_v34 = vunpack.i.h.bf16 %v4532_v21 }
 0x4dc   : > { %4290 = vmatprep.subr.bf16.mxu1 %v5242_v0 }
 0x4dd   : > { %v4300_v27 = vpack.c.bf16 %v4533_v24, %v4528_v23  ;;  %v4306_v37 = vpack.c.bf16 %v4536_v34, %v4531_v36 }
 0x4de   : > { %4197 = vmatmul.mubr.msk.f32.vlgmr.msra.gmra.mrb[4].mxu1 %vm1402_vm1, %v1196_v58 }
 0x4df   : > { %4301 = vmatpush3.bf16.msra.mxu0 %v4300_v27  ;;  %4292 = vmatpush3.bf16.msra.mxu1 %v4291_v29 }
 0x4e0   : > { %4207 = vmatprep.mubr.msk.f32.mxu1 %vm5238_vm0, %v5236_v4  ;;  %4293 = vmatprep.subr.bf16.mxu1 %v5242_v0 }
 0x4e2   : > { %4219 = vmatmul.mubr.msk.f32.vlgmr.msra.gmra.mrb[4].mxu0 %vm1402_vm1, %v1246_v1 }
 0x4e3   : > { %4295 = vmatpush3.bf16.msra.mxu1 %v4294_v32 }
 0x4e4   : > { %4302 = vmatprep.subr.bf16.mxu1 %v5242_v0 }
 0x4e6   : > { %4208 = vmatmul.mubr.msk.f32.vlgmr.msra.gmra.mrb[6].mxu1 %vm1402_vm1, %v1244_v2 }
 0x4e7   : > { %4304 = vmatpush3.bf16.msra.mxu1 %v4303_v35  ;;  %4229 = vmatprep.mubr.msk.f32.mxu1 %vm5238_vm0, %v5236_v4 }
 0x4e8   : > { %4305 = vmatprep.subr.bf16.mxu1 %v5242_v0  ;;  %v1028_v0 = vsub.s32 2, %v5950_v43 }
 0x4ea   : > { %v1029_v1 = vrot.slane %v5954_v45, %v1028_v0 }
 0x4eb   : > { %4307 = vmatpush3.bf16.msra.mxu1 %v4306_v37 }
 0x4ec   : > { %v1237_v2 = vadd.f32 %v5960_v49, %v1029_v1 }
 0x4ee   : > { %4230 = vmatmul.mubr.msk.f32.vlgmr.msra.gmra.mrb[8].mxu1 %vm1402_vm1, %v1248_v3 }
 0x5b1   : > { %v1471_v39 = vpop.f32.mrb[4].mxu1 }
 0x5b2   : > { %v1691_v40 = vmul.f32 0.17677669, %v1471_v39  ;;  %v4198_v41 = vpop.f32.mrb[5].mxu1 }
 0x5b4   : > { %v1697_v48 = vsel %vm1273_vm2, %v1691_v40, -1e+30 }
 0x5b5   : > { %v1615_v47 = vpop.f32.mrb[4].mxu0  ;;  %v1702_v52 = vsel %vm1701_vm3, %v1697_v48, -inf }
 0x5b6   : > { %v1693_v50 = vmul.f32 0.17677669, %v1615_v47  ;;  %v4220_v51 = vpop.f32.mrb[5].mxu0  ;;  %1703 = vmax.xlane.f32.xlu1 %v1702_v52 }
 0x5b8   : > { %v1699_v53 = vsel %vm1273_vm2, %v1693_v50, -1e+30 }
 0x5b9   : > { %v1708_v42 = vsel %vm1701_vm3, %v1699_v53, -inf  ;;  %v1543_v54 = vpop.f32.mrb[6].mxu1 }
 0x5ba   : > { %v1692_v55 = vmul.f32 0.17677669, %v1543_v54  ;;  %1709 = vmax.xlane.f32.xlu1 %v1708_v42  ;;  %v4209_v56 = vpop.f32.mrb[7].mxu1 }
 0x5bc   : > { %v1698_v57 = vsel %vm1273_vm2, %v1692_v55, -1e+30 }
 0x5bd   : > { %v1705_v58 = vsel %vm1701_vm3, %v1698_v57, -inf }
 0x5be   : > { %1706 = vmax.xlane.f32.xlu0 %v1705_v58 }
 0x5c1   : > { %v1687_v59 = vpop.f32.mrb[8].mxu1 }
 0x5c2   : > { %v1694_v60 = vmul.f32 0.17677669, %v1687_v59  ;;  %v4231_v61 = vpop.f32.mrb[9].mxu1 }
 0x5c4   : > { %v1700_v62 = vsel %vm1273_vm2, %v1694_v60, -1e+30 }
 0x5c5   : > { %v1711_v63 = vsel %vm1701_vm3, %v1700_v62, -inf }
 0x5c6   : > { %1712 = vmax.xlane.f32.xlu1 %v1711_v63 }
 0x5d4   : > { %1263 = vrot.lane.b32.xlu0 %v1237_v2, %s5241_s30 }
 0x5d7   : > { %1260 = vrot.lane.b32.xlu1 %v1237_v2, %s5240_s15 }
 0x5db   : > { %1266 = vrot.lane.b32.xlu1 %v1237_v2, %s5239_s8 }
 0x643   : > { %v1704_v3 = vpop.xlane.xlu1 %1703 }
 0x644   : > { %v1714_v5 = vsub.f32 %v1697_v48, %v1704_v3 }
 0x646   : > { %v1718_v6 = vmul.f32 1.442695, %v1714_v5 }
 0x647   : > { %v1710_v7 = vpop.xlane.xlu1 %1709 }
 0x648   : > { %4659 = vpow2.f32 %v1718_v6  ;;  %v1716_v8 = vsub.f32 %v1699_v53, %v1710_v7 }
 0x64a   : > { %v1722_v9 = vmul.f32 1.442695, %v1716_v8 }
 0x64b   : > { %v1707_v10 = vpop.xlane.xlu0 %1706 }
 0x64c   : > { %4661 = vpow2.f32 %v1722_v9  ;;  %v1715_v11 = vsub.f32 %v1698_v57, %v1707_v10 }
 0x64e   : > { %v1720_v12 = vmul.f32 1.442695, %v1715_v11 }
 0x64f   : > { %v1264_v23 = vpop.permute.xlu0 %1263 }
 0x650   : > { %4663 = vpow2.f32 %v1720_v12 }
 0x652   : > { %v4660_v45 = vpop.eup %4659 }
 0x653   : > { %v1713_v49 = vpop.xlane.xlu1 %1712  ;;  %v1726_v13 = vsel %vm1701_vm3, %v4660_v45, 0.0 }
 0x654   : > { %v1717_v14 = vsub.f32 %v1700_v62, %v1713_v49  ;;  %1727 = vadd.xlane.f32.xlu1 %v1726_v13  ;;  %v4570_v49 = vld [vmem:[%s5901_s9 + $0x8] sm:$0xff]   ;;  %v4571_v13 = vld [vmem:[%s5901_s9 + $0x10] sm:$0xff]  }
 0x656   : > { %v4662_v15 = vpop.eup %4661  ;;  %v1724_v16 = vmul.f32 1.442695, %v1717_v14  ;;  %v4572_v14 = vld [vmem:[%s5901_s9 + $0x18] sm:$0xff]  }
 0x657   : > { %v1732_v17 = vsel %vm1701_vm3, %v4662_v15, 0.0  ;;  %v1261_v22 = vpop.permute.xlu1 %1260 }
 0x658   : > { %4665 = vpow2.f32 %v1724_v16  ;;  %1733 = vadd.xlane.f32.xlu1 %v1732_v17  ;;  %v4574_v16 = vld [vmem:[%s5901_s9 + $0x28] sm:$0xff]  }
 0x65a   : > { %v4664_v18 = vpop.eup %4663 }
 0x65b   : > { %v1729_v19 = vsel %vm1701_vm3, %v4664_v18, 0.0  ;;  %v1267_v24 = vpop.permute.xlu1 %1266 }
 0x65c   : > { %1730 = vadd.xlane.f32.xlu0 %v1729_v19 }
 0x662   : > { %v4666_v20 = vpop.eup %4665 }
 0x663   : > { %v1735_v21 = vsel %vm1701_vm3, %v4666_v20, 0.0 }
 0x664   : > { %1736 = vadd.xlane.f32.xlu0 %v1735_v21  ;;  %v5244_v21 = vmov 1934713408  }
 0x68b   : > { %1746 = vxpose.xlu1.b32.start.end [1/1] (short) (narrow) %v1237_v2, 32 }
 0x691   : > { %1778 = vxpose.xlu0.b32.start.end [1/1] (short) (narrow) %v1261_v22, 32  ;;  %v2437_v22 = vunpack.c.l.s4 %v5244_v21 }
 0x698   : > { %1810 = vxpose.xlu1.b32.start.end [1/1] (short) (narrow) %v1264_v23, 32 }
 0x69e   : > { %1842 = vxpose.xlu0.b32.start.end [1/1] (short) (narrow) %v1267_v24, 32 }
 0x6e1   : > { %v1728_v25 = vpop.xlane.xlu1 %1727 }
 0x6e2   : > { %4667 = vrcp.f32 %v1728_v25  ;;  %v2438_v25 = vunpack.c.0.s8 %v2437_v22 }
 0x6e5   : > { %v1734_v27 = vpop.xlane.xlu1 %1733 }
 0x6e6   : > { %4669 = vrcp.f32 %v1734_v27 }
 0x6e9   : > { %v1731_v28 = vpop.xlane.xlu0 %1730 }
 0x6ea   : > { %4671 = vrcp.f32 %v1731_v28 }
 0x6ec   : > { %v4668_v29 = vpop.eup %4667 }
 0x6ed   : > { %v1742_v30 = vmul.f32 %v4668_v29, %v4660_v45  ;;  %v4569_v45 = vld [vmem:[%s5901_s9] sm:$0xff]  }
 0x6ef   : > { %4232 = vmatprep.subr.msk.mxu1 %vm1701_vm3, %v1742_v30 }
 0x6f0   : > { %v4670_v31 = vpop.eup %4669  ;;  %4233 = vmatpush3.xpose.msk.msra.mxu1 %vm1701_vm3, %v1742_v30 }
 0x6f1   : > { %v1744_v32 = vmul.f32 %v4670_v31, %v4662_v15  ;;  %v1737_v35 = vpop.xlane.xlu0 %1736  ;;  %v4573_v15 = vld [vmem:[%s5901_s9 + $0x20] sm:$0xff]  }
 0x6f2   : > { %4673 = vrcp.f32 %v1737_v35 }
 0x6f3   : > { %4248 = vmatprep.subr.msk.mxu0 %vm1701_vm3, %v1744_v32 }
 0x6f4   : > { %v4672_v33 = vpop.eup %4671  ;;  %4249 = vmatpush3.xpose.msk.msra.mxu0 %vm1701_vm3, %v1744_v32 }
 0x6f5   : > { %v1743_v34 = vmul.f32 %v4672_v33, %v4664_v18  ;;  %4264 = vmatprep.subr.bf16.mxu0 %v5236_v4  ;;  %v5243_v18 = vmov 1983009808   ;;  %v2441_v33 = vsub.s32 %v2438_v25, %v5950_v43  ;;  %v4582_v25 = vld [vmem:[%s5871_s24 + $0xc] ss:$16 sps:$4 sm:$0xff]  }
 0x6f6   : > { %v2405_v19 = vunpack.c.l.s4 %v5243_v18 }
 0x6f7   : > { %4240 = vmatprep.subr.msk.mxu1 %vm1701_vm3, %v1743_v34 }
 0x6f8   : > { %v2406_v23 = vunpack.c.0.s8 %v2405_v19 }
 0x6fa   : > { %v2409_v27 = vsub.s32 %v2406_v23, %v5950_v43  ;;  %v4577_v23 = vld [vmem:[%s5871_s24] ss:$16 sps:$4 sm:$0xff]  }
 0x6fc   : > { %v4674_v37 = vpop.eup %4673 }
 0x6fd   : > { %v1745_v39 = vmul.f32 %v4674_v37, %v4666_v20 }
 0x70b   : > { %v1762_v36 = vpop.trf.xlu1 }
 0x70c   : > { %4234 = vmatprep.mubr.msk.f32.mxu1 %vm1701_vm3, %v1762_v36 }
 0x70f   : > { %v1763_v38 = vpop.trf.xlu1 }
 0x710   : > { %4235 = vmatmul.mubr.msk.f32.vlgmr.msra.gmra.mrb[10].mxu1 %vm1701_vm3, %v1763_v38 }
 0x711   : > { %4241 = vmatpush3.xpose.msk.msra.mxu1 %vm1701_vm3, %v1743_v34  ;;  %v1794_v40 = vpop.trf.xlu0 }
 0x712   : > { %4256 = vmatprep.subr.msk.mxu1 %vm1701_vm3, %v1745_v39 }
 0x713   : > { %v1764_v41 = vpop.trf.xlu1 }
 0x714   : > { %4237 = vmatprep.mubr.msk.f32.mxu1 %vm1701_vm3, %v1764_v41 }
 0x715   : > { %v1795_v47 = vpop.trf.xlu0 }
 0x717   : > { %v1765_v48 = vpop.trf.xlu1 }
 0x718   : > { %4238 = vmatmul.mubr.msk.f32.gmra.mrb[12].mxu1 %vm1701_vm3, %v1765_v48 }
 0x719   : > { %4242 = vmatprep.mubr.msk.f32.mxu1 %vm1701_vm3, %v1794_v40  ;;  %v1796_v50 = vpop.trf.xlu0 }
 0x71b   : > { %v1826_v51 = vpop.trf.xlu1 }
 0x71c   : > { %4243 = vmatmul.mubr.msk.f32.vlgmr.msra.gmra.mrb[14].mxu1 %vm1701_vm3, %v1795_v47  ;;  %4250 = vmatprep.mubr.msk.f32.mxu0 %vm1701_vm3, %v1826_v51  ;;  %v4575_v47 = vld [vmem:[%s5901_s9 + $0x30] sm:$0xff]  }
 0x71d   : > { %4257 = vmatpush3.xpose.msk.msra.mxu1 %vm1701_vm3, %v1745_v39  ;;  %4245 = vmatprep.mubr.msk.f32.mxu1 %vm1701_vm3, %v1796_v50  ;;  %v1797_v52 = vpop.trf.xlu0 }
 0x71f   : > { %v1827_v53 = vpop.trf.xlu1 }
 0x720   : > { %4246 = vmatmul.mubr.msk.f32.gmra.mrb[16].mxu1 %vm1701_vm3, %v1797_v52  ;;  %4251 = vmatmul.mubr.msk.f32.vlgmr.msra.gmra.mrb[6].mxu0 %vm1701_vm3, %v1827_v53 }
 0x721   : > { %v1858_v42 = vpop.trf.xlu0  ;;  %4265 = vmatpush3.bf16.msra.mxu0 %v4569_v45 }
 0x722   : > { %4258 = vmatprep.mubr.msk.f32.mxu1 %vm1701_vm3, %v1858_v42  ;;  %4266 = vmatprep.subr.bf16.mxu0 %v5236_v4 }
 0x723   : > { %v1828_v54 = vpop.trf.xlu1 }
 0x724   : > { %4253 = vmatprep.mubr.msk.f32.mxu0 %vm1701_vm3, %v1828_v54 }
 0x725   : > { %v1859_v55 = vpop.trf.xlu0  ;;  %4267 = vmatpush3.bf16.msra.mxu0 %v4570_v49 }
 0x726   : > { %4259 = vmatmul.mubr.msk.f32.vlgmr.msra.gmra.mrb[18].mxu1 %vm1701_vm3, %v1859_v55  ;;  %4268 = vmatprep.subr.bf16.mxu0 %v5236_v4 }
 0x727   : > { %v1829_v56 = vpop.trf.xlu1 }
 0x728   : > { %4254 = vmatmul.mubr.msk.f32.gmra.mrb[8].mxu0 %vm1701_vm3, %v1829_v56  ;;  %v4576_v56 = vld [vmem:[%s5901_s9 + $0x38] sm:$0xff]   ;;  %s6377_s9 = scalar_lea.vmem [#allocation12], %s5836_s7 }
 0x729   : > { %v1860_v57 = vpop.trf.xlu0  ;;  %4280 = vmatprep.mubr.msk.bf16.mxu0 %vm5238_vm0, %v5236_v4  ;;  %4269 = vmatpush3.bf16.msra.mxu0 %v4571_v13 }
 0x72a   : > { %4261 = vmatprep.mubr.msk.f32.mxu1 %vm1701_vm3, %v1860_v57  ;;  %4270 = vmatprep.subr.bf16.mxu0 %v5236_v4 }
 0x72d   : > { %v1861_v58 = vpop.trf.xlu0  ;;  %4271 = vmatpush3.bf16.msra.mxu0 %v4572_v14 }
 0x72e   : > { %4262 = vmatmul.mubr.msk.f32.gmra.mrb[20].mxu1 %vm1701_vm3, %v1861_v58  ;;  %4272 = vmatprep.subr.bf16.mxu0 %v5236_v4 }
 0x72f   : > { %2942 = vmatprep.mubr.bf16.mxu1 %v5237_v26 }
 0x731   : > { %4273 = vmatpush3.bf16.msra.mxu0 %v4573_v15  ;;  %v3961_v15 = vld [vmem:[%s6377_s9] ss:$0 sm:$0xff] }
 0x732   : > { %4274 = vmatprep.subr.bf16.mxu0 %v5236_v4 }
 0x735   : > { %4275 = vmatpush3.bf16.msra.mxu0 %v4574_v16 }
 0x736   : > { %4276 = vmatprep.subr.bf16.mxu0 %v5236_v4 }
 0x739   : > { %4277 = vmatpush3.bf16.msra.mxu0 %v4575_v47  ;;  %v4598_v47 = vld [vmem:[%s5871_s24 + $0x68] ss:$16 sps:$4 sm:$0xff]  }
 0x73a   : > { %4278 = vmatprep.subr.bf16.mxu0 %v5236_v4 }
 0x73d   : > { %4279 = vmatpush3.bf16.msra.mxu0 %v4576_v56  ;;  %v4615_v56 = vld [vmem:[%s5871_s24 + $0xc4] ss:$16 sps:$4 sm:$0xff]  }
 0x73e   : > { %2951 = vmatprep.subr.bf16.mxu0 %v4582_v25  ;;  %v4641_v25 = vld [vmem:[%s5880_s3 + $0x60] sm:$0xff]  }
 0x7e3   : > { %v4236_v59 = vpop.f32.mrb[10].mxu1 }
 0x7e4   : > { %v1955_v60 = vpop.f32.mrb[11].mxu1 }
 0x7e5   : > { %2274 = vxpose.xlu1.b32.start [1/4] (short) (narrow) %v1955_v60, 8 }
 0x7e9   : > { %2275 = vxpose.xlu1.b32.cont [2/4] (short) (narrow) %v4236_v59, 8 }
 0x7eb   : > { %v4239_v61 = vpop.f32.mrb[12].mxu1 }
 0x7ec   : > { %v1965_v62 = vpop.f32.mrb[13].mxu1 }
 0x7ed   : > { %2276 = vxpose.xlu1.b32.cont [3/4] (short) (narrow) %v1965_v62, 8 }
 0x7ef   : > { %v4244_v63 = vpop.f32.mrb[14].mxu1 }
 0x7f0   : > { %v2055_v1 = vpop.f32.mrb[15].mxu1 }
 0x7f1   : > { %2277 = vxpose.xlu1.b32.end [4/4] (short) (narrow) %v4239_v61, 8  ;;  %2306 = vxpose.xlu0.b32.start [1/4] (short) (narrow) %v2055_v1, 8 }
 0x7f3   : > { %v4247_v2 = vpop.f32.mrb[16].mxu1  ;;  %v4252_v3 = vpop.f32.mrb[6].mxu0 }
 0x7f4   : > { %v2065_v5 = vpop.f32.mrb[17].mxu1  ;;  %v2155_v6 = vpop.f32.mrb[7].mxu0 }
 0x7f5   : > { %2307 = vxpose.xlu0.b32.cont [2/4] (short) (narrow) %v4244_v63, 8  ;;  %2338 = vxpose.xlu1.b32.start [1/4] (short) (narrow) %v2155_v6, 8 }
 0x7f9   : > { %2308 = vxpose.xlu0.b32.cont [3/4] (short) (narrow) %v2065_v5, 8  ;;  %v4260_v7 = vpop.f32.mrb[18].mxu1  ;;  %2339 = vxpose.xlu1.b32.cont [2/4] (short) (narrow) %v4252_v3, 8 }
 0x7fa   : > { %v2255_v8 = vpop.f32.mrb[19].mxu1 }
 0x7fb   : > { %v4255_v9 = vpop.f32.mrb[8].mxu0 }
 0x7fc   : > { %v2165_v10 = vpop.f32.mrb[9].mxu0 }
 0x7fd   : > { %2309 = vxpose.xlu0.b32.end [4/4] (short) (narrow) %v4247_v2, 8  ;;  %2340 = vxpose.xlu1.b32.cont [3/4] (short) (narrow) %v2165_v10, 8 }
 0x801   : > { %2370 = vxpose.xlu0.b32.start [1/4] (short) (narrow) %v2255_v8, 8  ;;  %v4263_v11 = vpop.f32.mrb[20].mxu1  ;;  %2341 = vxpose.xlu1.b32.end [4/4] (short) (narrow) %v4255_v9, 8 }
 0x802   : > { %v2265_v12 = vpop.f32.mrb[21].mxu1 }
 0x805   : > { %2371 = vxpose.xlu0.b32.cont [2/4] (short) (narrow) %v4260_v7, 8 }
 0x809   : > { %2372 = vxpose.xlu0.b32.cont [3/4] (short) (narrow) %v2265_v12, 8 }
 0x80d   : > { %2373 = vxpose.xlu0.b32.end [4/4] (short) (narrow) %v4263_v11, 8 }
 0x865   : > { %v2290_v17 = vpop.trf.xlu1 }
 0x871   : > { %v2322_v20 = vpop.trf.xlu0 }
 0x875   : > { %v2354_v24 = vpop.trf.xlu1 }
 0x876   : > { %v2402_v28 = vcombine.low %v2290_v17, %v2354_v24  ;;  %v2403_v29 = vcombine.high %v2290_v17, %v2354_v24  ;;  %v4579_v24 = vld [vmem:[%s5871_s24 + $0x4] ss:$16 sps:$4 sm:$0xff]  }
 0x877   : > { %2910 = vmatprep.subr.bf16.mxu1 %v4579_v24  ;;  %v4639_v24 = vld [vmem:[%s5880_s3 + $0x18] sm:$0xff]  }
 0x878   : > { %v2410_v34 = vrot.slane %v2402_v28, %v2409_v27  ;;  %v2417_v35 = vrot.slane %v2403_v29, %v2409_v27  ;;  %v4588_v28 = vld [vmem:[%s5871_s24 + $0x2c] ss:$16 sps:$4 sm:$0xff]   ;;  %2911 = vmatpush1.bf16.msra.mxu1 %v4577_v23  ;;  %v4583_v29 = vld [vmem:[%s5871_s24 + $0x20] ss:$16 sps:$4 sm:$0xff]  }
 0x879   : > { %v4638_v23 = vld [vmem:[%s5880_s3 + $0xd8] sm:$0xff]  }
 0x881   : > { %v2386_v30 = vpop.trf.xlu0 }
 0x882   : > { %v2418_v31 = vcombine.low %v2322_v20, %v2386_v30  ;;  %v2419_v32 = vcombine.high %v2322_v20, %v2386_v30  ;;  %v4685_v20 = vld [vmem:[#allocation2] sm:$0xff] }
 0x883   : > { %v4586_v30 = vld [vmem:[%s5871_s24 + $0x28] ss:$16 sps:$4 sm:$0xff]  }
 0x884   : > { %v2426_v36 = vrot.slane %v2418_v31, %v2409_v27  ;;  %v2433_v37 = vrot.slane %v2419_v32, %v2409_v27  ;;  %v4591_v31 = vld [vmem:[%s5871_s24 + $0x44] ss:$16 sps:$4 sm:$0xff]   ;;  %v4594_v32 = vld [vmem:[%s5871_s24 + $0x4c] ss:$16 sps:$4 sm:$0xff]  }
 0x886   : > { %v2434_v38 = vcombine.low %v2410_v34, %v2426_v36  ;;  %v2435_v39 = vcombine.high %v2410_v34, %v2426_v36  ;;  %v2450_v40 = vcombine.low %v2417_v35, %v2433_v37  ;;  %v2451_v41 = vcombine.high %v2417_v35, %v2433_v37  ;;  %v4592_v34 = vld [vmem:[%s5871_s24 + $0x48] ss:$16 sps:$4 sm:$0xff]  }
 0x888   : > { %v2442_v48 = vrot.slane %v2434_v38, %v2441_v33  ;;  %v2449_v50 = vrot.slane %v2435_v39, %v2441_v33  ;;  %v2458_v51 = vrot.slane %v2450_v40, %v2441_v33  ;;  %v2465_v52 = vrot.slane %v2451_v41, %v2441_v33  ;;  %v4597_v39 = vld [vmem:[%s5871_s24 + $0x64] ss:$16 sps:$4 sm:$0xff]   ;;  %v4600_v40 = vld [vmem:[%s5871_s24 + $0x6c] ss:$16 sps:$4 sm:$0xff]   ;;  %v4595_v41 = vld [vmem:[%s5871_s24 + $0x60] ss:$16 sps:$4 sm:$0xff]  }
 0x88a   : > { %v2470_v53 = vcombine.low %v2442_v48, %v2449_v50  ;;  %v3959_v42 = vcombine.high %v2442_v48, %v2449_v50  ;;  %v2486_v54 = vcombine.low %v2458_v51, %v2465_v52  ;;  %v3960_v55 = vcombine.high %v2458_v51, %v2465_v52  ;;  %v4603_v48 = vld [vmem:[%s5871_s24 + $0x84] ss:$16 sps:$4 sm:$0xff]   ;;  %v4606_v50 = vld [vmem:[%s5871_s24 + $0x8c] ss:$16 sps:$4 sm:$0xff]   ;;  %v4601_v51 = vld [vmem:[%s5871_s24 + $0x80] ss:$16 sps:$4 sm:$0xff]  }
 0x88b   : > { %v4604_v52 = vld [vmem:[%s5871_s24 + $0x88] ss:$16 sps:$4 sm:$0xff]  }
 0x88c   : > { %v2477_v57 = vrot.slane %v2470_v53, %v2409_v27  ;;  %v2485_v58 = vrot.slane %v3959_v42, %v2409_v27  ;;  %v2493_v59 = vrot.slane %v2486_v54, %v2409_v27  ;;  %v2501_v60 = vrot.slane %v3960_v55, %v2409_v27  ;;  %v4585_v27 = vld [vmem:[%s5871_s24 + $0x24] ss:$16 sps:$4 sm:$0xff]   ;;  %v4612_v42 = vld [vmem:[%s5871_s24 + $0xac] ss:$16 sps:$4 sm:$0xff]   ;;  %v4607_v54 = vld [vmem:[%s5871_s24 + $0xa0] ss:$16 sps:$4 sm:$0xff]  }
 0x88d   : > { %2912 = vmatprep.subr.bf16.mxu1 %v4585_v27  ;;  %v4609_v53 = vld [vmem:[%s5871_s24 + $0xa4] ss:$16 sps:$4 sm:$0xff]   ;;  %v4610_v55 = vld [vmem:[%s5871_s24 + $0xa8] ss:$16 sps:$4 sm:$0xff]  }
 0x88e   : > { %v2503_v61 = vcombine.high %v2477_v57, %v2485_v58  ;;  %v2519_v62 = vcombine.high %v2493_v59, %v2501_v60  ;;  %v2502_v63 = vcombine.low %v2477_v57, %v2485_v58  ;;  %v2518_v1 = vcombine.low %v2493_v59, %v2501_v60  ;;  %2913 = vmatpush1.bf16.msra.mxu1 %v4583_v29  ;;  %v4618_v57 = vld [vmem:[%s5871_s24 + $0xcc] ss:$16 sps:$4 sm:$0xff]   ;;  %v4613_v58 = vld [vmem:[%s5871_s24 + $0xc0] ss:$16 sps:$4 sm:$0xff]   ;;  %v4616_v59 = vld [vmem:[%s5871_s24 + $0xc8] ss:$16 sps:$4 sm:$0xff]  }
 0x88f   : > { %2914 = vmatprep.subr.bf16.mxu1 %v4591_v31  ;;  %v4619_v60 = vld [vmem:[%s5871_s24 + $0xe0] ss:$16 sps:$4 sm:$0xff]   ;;  %v4642_v27 = vld [vmem:[%s5880_s3 + $0xe0] sm:$0xff]  }
 0x890   : > { %v2517_v2 = vrot.slane %v2503_v61, %v2441_v33  ;;  %v2533_v3 = vrot.slane %v2519_v62, %v2441_v33  ;;  %v2510_v5 = vrot.slane %v2502_v63, %v2441_v33  ;;  %v2526_v6 = vrot.slane %v2518_v1, %v2441_v33  ;;  %v4589_v33 = vld [vmem:[%s5871_s24 + $0x40] ss:$16 sps:$4 sm:$0xff]   ;;  %v4621_v61 = vld [vmem:[%s5871_s24 + $0xe4] ss:$16 sps:$4 sm:$0xff]   ;;  %v4622_v62 = vld [vmem:[%s5871_s24 + $0xe8] ss:$16 sps:$4 sm:$0xff]  }
 0x891   : > { %v4624_v63 = vld [vmem:[%s5871_s24 + $0xec] ss:$16 sps:$4 sm:$0xff]   ;;  %v4646_v31 = vld [vmem:[%s5880_s3 + $0xe8] sm:$0xff]  }
 0x892   : > { %v2536_v7 = vcombine.low %v2517_v2, %v2533_v3  ;;  %v2535_v4 = vcombine.high %v2510_v5, %v2526_v6  ;;  %v2534_v8 = vcombine.low %v2510_v5, %v2526_v6  ;;  %v2537_v9 = vcombine.high %v2517_v2, %v2533_v3  ;;  %2915 = vmatpush1.bf16.msra.mxu1 %v4589_v33  ;;  %v3970_v6 = vld [vmem:[%s6378_s23] ss:$0 sm:$0xff]  ;;  %v4644_v29 = vld [vmem:[%s5880_s3 + $0xa0] sm:$0xff]   ;;  %v4648_v33 = vld [vmem:[%s5880_s3 + $0xa8] sm:$0xff]  }
 0x893   : > { %2916 = vmatprep.subr.bf16.mxu1 %v4597_v39  ;;  %v4654_v39 = vld [vmem:[%s5880_s3 + $0xf8] sm:$0xff]  }
 0x894   : > { %2543 = vrot.lane.b32.xlu0 %v2536_v7, %s5241_s30  ;;  %2539 = vrot.lane.b32.xlu1 %v2535_v4, %s5239_s8  ;;  %v3971_v4 = vld [vmem:[%s6379_s19] ss:$0 sm:$0xff] }
 0x896   : > { %2917 = vmatpush1.bf16.msra.mxu1 %v4595_v41  ;;  %v4656_v41 = vld [vmem:[%s5880_s3 + $0xb8] sm:$0xff]  }
 0x897   : > { %2918 = vmatprep.subr.bf16.mxu1 %v4603_v48  ;;  %v2744_v48 = vsub.s32 3, %v5950_v43 }
 0x898   : > { %2547 = vrot.lane.b32.xlu1 %v2537_v9, %s5240_s15 }
 0x89a   : > { %2919 = vmatpush1.bf16.msra.mxu1 %v4601_v51 }
 0x89b   : > { %2920 = vmatprep.subr.bf16.mxu1 %v4609_v53 }
 0x89e   : > { %2921 = vmatpush1.bf16.msra.mxu1 %v4607_v54 }
 0x89f   : > { %2922 = vmatprep.subr.bf16.mxu1 %v4615_v56 }
 0x8a2   : > { %2923 = vmatpush1.bf16.msra.mxu1 %v4613_v58 }
 0x8a3   : > { %2924 = vmatprep.subr.bf16.mxu1 %v4621_v61 }
 0x8a6   : > { %2925 = vmatpush1.bf16.msra.mxu1 %v4619_v60 }
 0x906   : > { %v2540_v10 = vpop.permute.xlu1 %2539  ;;  %v2544_v11 = vpop.permute.xlu0 %2543 }
 0x907   : > { %v2550_v12 = vsel %vm1402_vm1, %v2534_v8, %v2540_v10 }
 0x908   : > { %v2552_v49 = vsel %vm2551_vm4, %v2550_v12, %v2544_v11  ;;  %v4625_v11 = vld [vmem:[%s5880_s3 + $0x40] sm:$0xff]  }
 0x909   : > { %v4626_v12 = vld [vmem:[%s5880_s3 + $0xc0] sm:$0xff]   ;;  %4124 = vmatprep.subr.bf16.mxu1 %v4625_v11 }
 0x90a   : > { %v2548_v45 = vpop.permute.xlu1 %2547 }
 0x90b   : > { %v2554_v13 = vsel %vm2553_vm5, %v2552_v49, %v2548_v45  ;;  %v4627_v45 = vld [vmem:[%s5880_s3] sm:$0xff]  }
 0x90c   : > { %v2555_v14 = vpack.c.bf16 %v2554_v13, %v2554_v13  ;;  %v4628_v49 = vld [vmem:[%s5880_s3 + $0x80] sm:$0xff]   ;;  %v4629_v13 = vld [vmem:[%s5880_s3 + $0x48] sm:$0xff]  }
 0x90e   : > { %4281 = vmatmul.mubr.bf16.vlgmr.msra.gmra.mrb[12].mxu0 %v2555_v14  ;;  %v4630_v14 = vld [vmem:[%s5880_s3 + $0xc8] sm:$0xff]  }
 0x90f   : > { %2983 = vmatprep.mubr.bf16.mxu0 %v5237_v26  ;;  %v4580_v26 = vld [vmem:[%s5871_s24 + $0x8] ss:$16 sps:$4 sm:$0xff]   ;;  %s6380_s24 = scalar_lea.vmem [#allocation21], %s5836_s7 }
 0x910   : > { %2952 = vmatpush1.bf16.msra.mxu0 %v4580_v26  ;;  %v4640_v26 = vld [vmem:[%s5880_s3 + $0x98] sm:$0xff]  }
 0x911   : > { %2953 = vmatprep.subr.bf16.mxu0 %v4588_v28  ;;  %v4643_v28 = vld [vmem:[%s5880_s3 + $0x20] sm:$0xff]  }
 0x914   : > { %2954 = vmatpush1.bf16.msra.mxu0 %v4586_v30  ;;  %v4645_v30 = vld [vmem:[%s5880_s3 + $0x68] sm:$0xff]  }
 0x915   : > { %2955 = vmatprep.subr.bf16.mxu0 %v4594_v32  ;;  %v4647_v32 = vld [vmem:[%s5880_s3 + $0x28] sm:$0xff]  }
 0x918   : > { %2956 = vmatpush1.bf16.msra.mxu0 %v4592_v34  ;;  %v4649_v34 = vld [vmem:[%s5880_s3 + $0x70] sm:$0xff]  }
 0x919   : > { %2957 = vmatprep.subr.bf16.mxu0 %v4600_v40  ;;  %v4655_v40 = vld [vmem:[%s5880_s3 + $0x38] sm:$0xff]  }
 0x91c   : > { %2958 = vmatpush1.bf16.msra.mxu0 %v4598_v47  ;;  %v2728_v47 = vld [vmem:[%s5874_s27] sm:$0xf]  ;;  %s6381_s27 = sld [smem:[#allocation34_spill]] }
 0x91d   : > { %2959 = vmatprep.subr.bf16.mxu0 %v4606_v50  ;;  %v2733_v50 = vrot.slane %v2728_v47, %v1020_v46  ;;  %v2741_v51 = vrot.slane %v2728_v47, %v1028_v0  ;;  %v2745_v53 = vrot.slane %v2728_v47, %v2744_v48 }
 0x920   : > { %2960 = vmatpush1.bf16.msra.mxu0 %v4604_v52  ;;  %v2737_v52 = vrot.slane %v2728_v47, %v1024_v44 }
 0x921   : > { %2961 = vmatprep.subr.bf16.mxu0 %v4612_v42 }
 0x922   : > { %p4037_p0 = scmp.ne.s32.totalorder %s6381_s27, 1 }
 0x923   : > { %s6382_s5 = sld [smem:[#allocation44_spill]] (!%p4037_p0)  ;;  %s6383_s23 = sld [smem:[#allocation42_spill]] (!%p4037_p0) }
 0x924   : > { %2962 = vmatpush1.bf16.msra.mxu0 %v4610_v55 }
 0x925   : > { %2963 = vmatprep.subr.bf16.mxu0 %v4618_v57 }
 0x928   : > { %2964 = vmatpush1.bf16.msra.mxu0 %v4616_v59 }
 0x929   : > { %2965 = vmatprep.subr.bf16.mxu0 %v4624_v63 }
 0x92c   : > { %2966 = vmatpush1.bf16.msra.mxu0 %v4622_v62 }
 0x92d   : > { %4146 = vmatprep.subr.bf16.mxu0 %v4626_v12 }
 0x9e1   : > { %v2661_v16 = vpop.f32.mrb[12].mxu0 }
 0x9e2   : > { %v2662_v17 = vadd.f32 %v3961_v15, %v2661_v16  ;;  %v4282_v18 = vpop.f32.mrb[13].mxu0  ;;  %v4631_v15 = vld [vmem:[%s5880_s3 + $0x8] sm:$0xff]  }
 0x9e3   : > { %v2664_v19 = vpop.f32.mrb[14].mxu0  ;;  %v4632_v16 = vld [vmem:[%s5880_s3 + $0x88] sm:$0xff]   ;;  %v4634_v18 = vld [vmem:[%s5880_s3 + $0xd0] sm:$0xff]  }
 0x9e4   : > { %v6057_v21 = vadd.f32 %v4685_v20, %v2662_v17  ;;  %v4283_v22 = vpop.f32.mrb[15].mxu0  ;;  %v4633_v17 = vld [vmem:[%s5880_s3 + $0x50] sm:$0xff]  }
 0x9e5   : > { %v4635_v19 = vld [vmem:[%s5880_s3 + $0x10] sm:$0xff]   ;;  %v4637_v22 = vld [vmem:[%s5880_s3 + $0x58] sm:$0xff]  }
 0x9e6   : > { %2670 = vadd.xlane.f32.xlu1 %v6057_v21  ;;  %v4636_v20 = vld [vmem:[%s5880_s3 + $0x90] sm:$0xff]  }
 0xa73   : > { %v2671_v35 = vpop.xlane.xlu1 %2670 }
 0xa74   : > { %v2672_v36 = vmul.f32 0.0078125, %v2671_v35  ;;  %v4650_v35 = vld [vmem:[%s5880_s3 + $0xf0] sm:$0xff]  }
 0xa76   : > { %v2673_v37 = vsub.f32 %v6057_v21, %v2672_v36  ;;  %v4651_v36 = vld [vmem:[%s5880_s3 + $0x30] sm:$0xff]  }
 0xa78   : > { %v2674_v38 = vmul.f32 %v2673_v37, %v2673_v37 }
 0xa7a   : > { %2675 = vadd.xlane.f32.xlu0 %v2674_v38  ;;  %v4653_v38 = vld [vmem:[%s5880_s3 + $0x78] sm:$0xff]  }
 0xb07   : > { %v2676_v1 = vpop.xlane.xlu0 %2675 }
 0xb08   : > { %v2677_v2 = vmul.f32 0.0078125, %v2676_v1 }
 0xb0a   : > { %v2678_v3 = vadd.f32 1e-05, %v2677_v2 }
 0xb0c   : > { %4675 = vrsqrt.f32 %v2678_v3 }
 0xb16   : > { %v4676_v5 = vpop.eup %4675 }
 0xb17   : > { %v2680_v7 = vmul.f32 %v4676_v5, %v2673_v37  ;;  %v4652_v37 = vld [vmem:[%s5880_s3 + $0xb0] sm:$0xff]  }
 0xb19   : > { %v2687_v8 = vmul.f32 %v3970_v6, %v2680_v7 }
 0xb1b   : > { %v2694_v9 = vadd.f32 %v3971_v4, %v2687_v8 }
 0xb1d   : > { %v2695_v10 = vpack.c.bf16 %v2694_v9, %v2694_v9 }
 0xb1f   : > { %2943 = vmatmul.mubr.bf16.vlgmr.msra.gmra.mrb[24].mxu1 %v2695_v10  ;;  %2984 = vmatmul.mubr.bf16.vlgmr.msra.gmra.mrb[16].mxu0 %v2695_v10 }
 0xb20   : > { %4125 = vmatpush3.bf16.msra.mxu1 %v4627_v45  ;;  %4147 = vmatpush3.bf16.msra.mxu0 %v4628_v49 }
 0xb21   : > { %4126 = vmatprep.subr.bf16.mxu1 %v4629_v13  ;;  %4148 = vmatprep.subr.bf16.mxu0 %v4630_v14 }
 0xb24   : > { %4127 = vmatpush3.bf16.msra.mxu1 %v4631_v15  ;;  %4149 = vmatpush3.bf16.msra.mxu0 %v4632_v16 }
 0xb25   : > { %4128 = vmatprep.subr.bf16.mxu1 %v4633_v17  ;;  %4150 = vmatprep.subr.bf16.mxu0 %v4634_v18 }
 0xb28   : > { %4129 = vmatpush3.bf16.msra.mxu1 %v4635_v19  ;;  %4151 = vmatpush3.bf16.msra.mxu0 %v4636_v20 }
 0xb29   : > { %4130 = vmatprep.subr.bf16.mxu1 %v4637_v22  ;;  %4152 = vmatprep.subr.bf16.mxu0 %v4638_v23 }
 0xb2c   : > { %4131 = vmatpush3.bf16.msra.mxu1 %v4639_v24  ;;  %4153 = vmatpush3.bf16.msra.mxu0 %v4640_v26 }
 0xb2d   : > { %4132 = vmatprep.subr.bf16.mxu1 %v4641_v25  ;;  %4154 = vmatprep.subr.bf16.mxu0 %v4642_v27 }
 0xb30   : > { %4133 = vmatpush3.bf16.msra.mxu1 %v4643_v28  ;;  %4155 = vmatpush3.bf16.msra.mxu0 %v4644_v29 }
 0xb31   : > { %4134 = vmatprep.subr.bf16.mxu1 %v4645_v30  ;;  %4156 = vmatprep.subr.bf16.mxu0 %v4646_v31 }
 0xb34   : > { %4135 = vmatpush3.bf16.msra.mxu1 %v4647_v32  ;;  %4157 = vmatpush3.bf16.msra.mxu0 %v4648_v33 }
 0xb35   : > { %4136 = vmatprep.subr.bf16.mxu1 %v4649_v34  ;;  %4158 = vmatprep.subr.bf16.mxu0 %v4650_v35 }
 0xb38   : > { %4137 = vmatpush3.bf16.msra.mxu1 %v4651_v36  ;;  %4159 = vmatpush3.bf16.msra.mxu0 %v4652_v37 }
 0xb39   : > { %4138 = vmatprep.subr.bf16.mxu1 %v4653_v38  ;;  %4160 = vmatprep.subr.bf16.mxu0 %v4654_v39  ;;  %v4004_v39 = vld [vmem:[%s6380_s24] ss:$0 sm:$0xff] }
 0xb3c   : > { %4139 = vmatpush3.bf16.msra.mxu1 %v4655_v40  ;;  %4161 = vmatpush3.bf16.msra.mxu0 %v4656_v41 }
 0xbf2   : > { %v2944_v42 = vpop.f32.mrb[24].mxu1  ;;  %v2985_v54 = vpop.f32.mrb[16].mxu0 }
 0xbf3   : > { %v2945_v55 = vadd.f32 %v2944_v42, %v2733_v50  ;;  %v2986_v56 = vadd.f32 %v2985_v54, %v2741_v51  ;;  %v2946_v57 = vpop.f32.mrb[25].mxu1  ;;  %v2987_v58 = vpop.f32.mrb[17].mxu0 }
 0xbf4   : > { %v2947_v59 = vadd.f32 %v2946_v57, %v2737_v52  ;;  %v2988_v60 = vadd.f32 %v2987_v58, %v2745_v53  ;;  %v2948_v61 = vpop.f32.mrb[26].mxu1  ;;  %v2989_v62 = vpop.f32.mrb[18].mxu0  ;;  %v4688_v57 = vld [vmem:[%s6382_s5] ss:$8 sps:$4 sm:$0xff] (!%p4037_p0)   ;;  %v4689_v58 = vld [vmem:[%s6382_s5 + $0x14] ss:$8 sps:$4 sm:$0xff] (!%p4037_p0)  }
 0xbf5   : > { %v2996_v63 = vmul.f32 0.044715, %v2945_v55  ;;  %v2998_v1 = vmul.f32 0.044715, %v2986_v56  ;;  %v2949_v46 = vpop.f32.mrb[27].mxu1  ;;  %v2990_v2 = vpop.f32.mrb[19].mxu0 }
 0xbf6   : > { %v2997_v3 = vmul.f32 0.044715, %v2947_v59  ;;  %v2999_v0 = vmul.f32 0.044715, %v2988_v60  ;;  %v2992_v18 = vmul.f32 0.5, %v2945_v55  ;;  %v2993_v22 = vmul.f32 0.5, %v2947_v59 }
 0xbf7   : > { %v3000_v5 = vmul.f32 %v2996_v63, %v2945_v55  ;;  %v3002_v43 = vmul.f32 %v2998_v1, %v2986_v56  ;;  %v2995_v26 = vmul.f32 0.5, %v2988_v60  ;;  %v2994_v29 = vmul.f32 0.5, %v2986_v56  ;;  %v4692_v63 = vld [vmem:[%s6382_s5 + $0x24] ss:$8 sps:$4 sm:$0xff] (!%p4037_p0)   ;;  %v4694_v1 = vld [vmem:[%s6382_s5 + $0x20] ss:$8 sps:$4 sm:$0xff] (!%p4037_p0)  }
 0xbf8   : > { %v3001_v44 = vmul.f32 %v2997_v3, %v2947_v59  ;;  %v3003_v6 = vmul.f32 %v2999_v0, %v2988_v60  ;;  %v4695_v46 = vld [vmem:[%s6382_s5 + $0x34] ss:$8 sps:$4 sm:$0xff] (!%p4037_p0)   ;;  %v4697_v2 = vld [vmem:[%s6382_s5 + $0x30] ss:$8 sps:$4 sm:$0xff] (!%p4037_p0)   ;;  %v4698_v3 = vld [vmem:[%s6382_s5 + $0x44] ss:$8 sps:$4 sm:$0xff] (!%p4037_p0)  }
 0xbf9   : > { %v3004_v7 = vmul.f32 %v3000_v5, %v2945_v55  ;;  %v3006_v4 = vmul.f32 %v3002_v43, %v2986_v56  ;;  %v4700_v0 = vld [vmem:[%s6382_s5 + $0x40] ss:$8 sps:$4 sm:$0xff] (!%p4037_p0)   ;;  %v4701_v5 = vld [vmem:[%s6382_s5 + $0x54] ss:$8 sps:$4 sm:$0xff] (!%p4037_p0)   ;;  %v5245_v43 = vmov (!%p4037_p0), 0  }
 0xbfa   : > { %v3005_v8 = vmul.f32 %v3001_v44, %v2947_v59  ;;  %v3007_v9 = vmul.f32 %v3003_v6, %v2988_v60  ;;  %v4703_v44 = vld [vmem:[%s6382_s5 + $0x50] ss:$8 sps:$4 sm:$0xff] (!%p4037_p0)   ;;  %v4704_v6 = vld [vmem:[%s6382_s5 + $0x64] ss:$8 sps:$4 sm:$0xff] (!%p4037_p0)  }
 0xbfb   : > { %v3008_v10 = vadd.f32 %v3004_v7, %v2945_v55  ;;  %v3010_v11 = vadd.f32 %v3006_v4, %v2986_v56  ;;  %v4686_v56 = vld [vmem:[%s6382_s5 + $0x4] ss:$8 sps:$4 sm:$0xff] (!%p4037_p0)   ;;  %v4706_v7 = vld [vmem:[%s6382_s5 + $0x60] ss:$8 sps:$4 sm:$0xff] (!%p4037_p0)   ;;  %v4707_v4 = vld [vmem:[%s6382_s5 + $0x74] ss:$8 sps:$4 sm:$0xff] (!%p4037_p0)  }
 0xbfc   : > { %v3009_v12 = vadd.f32 %v3005_v8, %v2947_v59  ;;  %v3011_v45 = vadd.f32 %v3007_v9, %v2988_v60  ;;  %3505 = vmatprep.subr.bf16.mxu0 (!%p4037_p0), %v4686_v56  ;;  %v4709_v8 = vld [vmem:[%s6382_s5 + $0x70] ss:$8 sps:$4 sm:$0xff] (!%p4037_p0)  }
 0xbfd   : > { %v3012_v49 = vmul.f32 0.7978846, %v3008_v10  ;;  %v3014_v15 = vmul.f32 0.7978846, %v3010_v11 }
 0xbfe   : > { %v3013_v13 = vmul.f32 0.7978846, %v3009_v12  ;;  %v3015_v14 = vmul.f32 0.7978846, %v3011_v45  ;;  %v4038_v45 = vld [vmem:[%s6383_s23] ss:$0 sm:$0xff] (!%p4037_p0) }
 0xbff   : > { %4677 = vtanh.f32 %v3012_v49 }
 0xc00   : > { %4679 = vtanh.f32 %v3013_v13  ;;  %v4039_v13 = vld [vmem:[#allocation3] ss:$0 sm:$0xff] (!%p4037_p0) }
 0xc01   : > { %4681 = vtanh.f32 %v3015_v14 }
 0xc02   : > { %4683 = vtanh.f32 %v3014_v15 }
 0xc09   : > { %v4678_v16 = vpop.eup %4677 }
 0xc0a   : > { %v4680_v17 = vpop.eup %4679  ;;  %v3020_v19 = vadd.f32 1.0, %v4678_v16 }
 0xc0b   : > { %v4682_v20 = vpop.eup %4681  ;;  %v3021_v23 = vadd.f32 1.0, %v4680_v17 }
 0xc0c   : > { %v4684_v24 = vpop.eup %4683  ;;  %v3023_v25 = vadd.f32 1.0, %v4682_v20  ;;  %v3024_v27 = vmul.f32 %v3020_v19, %v2992_v18 }
 0xc0d   : > { %v3025_v28 = vmul.f32 %v3021_v23, %v2993_v22  ;;  %v3022_v30 = vadd.f32 1.0, %v4684_v24 }
 0xc0e   : > { %v3027_v31 = vmul.f32 %v3023_v25, %v2995_v26  ;;  %v3028_v35 = vpack.c.bf16 %v3024_v27, %v3024_v27 }
 0xc0f   : > { %v3029_v32 = vpack.c.bf16 %v3025_v28, %v3025_v28  ;;  %v3026_v33 = vmul.f32 %v3022_v30, %v2994_v29 }
 0xc10   : > { %v3031_v34 = vpack.c.bf16 %v3027_v31, %v3027_v31 }
 0xc11   : > { %3327 = vmatprep.mubr.bf16.mxu1 %v3029_v32  ;;  %v3030_v36 = vpack.c.bf16 %v3026_v33, %v3026_v33 }
 0xc12   : > { %3367 = vmatprep.mubr.bf16.mxu0 %v3031_v34  ;;  %3328 = vmatmul.mubr.bf16.vlgmr.msra.gmra.mrb[28].mxu1 %v3028_v35 }
 0xc13   : > { %3368 = vmatmul.mubr.bf16.vlgmr.msra.gmra.mrb[20].mxu0 %v3030_v36 }
 0xc14   : > { %3506 = vmatpush1.bf16.msra.mxu0 (!%p4037_p0), %v4688_v57  ;;  %3537 = vmatprep.mubr.bf16.mxu0 (!%p4037_p0), %v5245_v43 }
 0xc15   : > { %3507 = vmatprep.subr.bf16.mxu0 (!%p4037_p0), %v4689_v58 }
 0xce5   : > { %v4140_v37 = vpop.f32.mrb[28].mxu1 }
 0xce6   : > { %v4162_v38 = vpop.f32.mrb[20].mxu0  ;;  %v4141_v40 = vpop.f32.mrb[29].mxu1 }
 0xce7   : > { %v4142_v41 = vadd.f32 %v4141_v40, %v4140_v37  ;;  %v4163_v47 = vpop.f32.mrb[21].mxu0  ;;  %v4143_v48 = vpop.f32.mrb[30].mxu1 }
 0xce8   : > { %v4164_v50 = vadd.f32 %v4163_v47, %v4162_v38  ;;  %v4165_v51 = vpop.f32.mrb[22].mxu0  ;;  %v4144_v52 = vpop.f32.mrb[31].mxu1 }
 0xce9   : > { %v3330_v53 = vadd.f32 %v4142_v41, %v4004_v39  ;;  %v4166_v42 = vpop.f32.mrb[23].mxu0  ;;  %3380 = sbr.rel (%p4037_p0) target bundleno = 3839 (0xeff), region = 140 }
 0xceb   : > { %v3370_v54 = vadd.f32 %v4164_v50, %v3330_v53 }
 0xced   : > { %v3375_v55 = vadd.f32 %v3370_v54, %v6057_v21  ;;  %v4691_v21 = vld [vmem:[%s6382_s5 + $0x10] ss:$8 sps:$4 sm:$0xff] (!%p4037_p0)  }
 0xcee   : > { %3508 = vmatpush1.bf16.msra.mxu0 (!%p4037_p0), %v4691_v21 }
 0xcef   : > { %3376 = vst [vmem:[#allocation2] sm:$0xff] %v3375_v55  ;;  %3383 = vadd.xlane.f32.xlu0 (!%p4037_p0), %v3375_v55  ;;  %3509 = vmatprep.subr.bf16.mxu0 (!%p4037_p0), %v4692_v63 }
 0xcf2   : > { %3510 = vmatpush1.bf16.msra.mxu0 %v4694_v1 }
 0xcf3   : > { %3511 = vmatprep.subr.bf16.mxu0 %v4695_v46 }
 0xcf6   : > { %3512 = vmatpush1.bf16.msra.mxu0 %v4697_v2 }
 0xcf7   : > { %3513 = vmatprep.subr.bf16.mxu0 %v4698_v3 }
 0xcfa   : > { %3514 = vmatpush1.bf16.msra.mxu0 %v4700_v0 }
 0xcfb   : > { %3515 = vmatprep.subr.bf16.mxu0 %v4701_v5 }
 0xcfe   : > { %3516 = vmatpush1.bf16.msra.mxu0 %v4703_v44 }
 0xcff   : > { %3517 = vmatprep.subr.bf16.mxu0 %v4704_v6 }
 0xd02   : > { %3518 = vmatpush1.bf16.msra.mxu0 %v4706_v7 }
 0xd03   : > { %3519 = vmatprep.subr.bf16.mxu0 %v4707_v4 }
 0xd06   : > { %3520 = vmatpush1.bf16.msra.mxu0 %v4709_v8 }
 0xd7c   : > { %v3384_v59 = vpop.xlane.xlu0 %3383 }
 0xd7d   : > { %v3385_v60 = vmul.f32 0.0078125, %v3384_v59 }
 0xd7f   : > { %v3386_v61 = vsub.f32 %v3375_v55, %v3385_v60 }
 0xd81   : > { %v3387_v62 = vmul.f32 %v3386_v61, %v3386_v61 }
 0xd83   : > { %3388 = vadd.xlane.f32.xlu0 %v3387_v62 }
 0xe10   : > { %v3389_v9 = vpop.xlane.xlu0 %3388 }
 0xe11   : > { %v3390_v10 = vmul.f32 0.0078125, %v3389_v9 }
 0xe13   : > { %v3391_v11 = vadd.f32 1e-05, %v3390_v10 }
 0xe15   : > { %4710 = vrsqrt.f32 %v3391_v11 }
 0xe1f   : > { %v4711_v12 = vpop.eup %4710 }
 0xe20   : > { %v3393_v49 = vmul.f32 %v4711_v12, %v3386_v61 }
 0xe22   : > { %v3400_v14 = vmul.f32 %v4038_v45, %v3393_v49 }
 0xe24   : > { %v3407_v15 = vadd.f32 %v4039_v13, %v3400_v14 }
 0xe26   : > { %v3408_v16 = vpack.c.bf16 %v3407_v15, %v3407_v15 }
 0xe28   : > { %3538 = vmatmul.mubr.bf16.vlgmr.msra.gmra.mrb[0].mxu0 %v3408_v16 }
 0xefb   : > { %v3539_v17 = vpop.f32.mrb[0].mxu0 }
 0xefc   : > { %3546 = vst [vmem:[%s5903_s12] sm:$0xff] %v3539_v17  ;;  %v3541_v18 = vpop.f32.mrb[1].mxu0 }
 0xefd   : > { %3547 = vst [vmem:[%s5903_s12 + $0x8] sm:$0xff] %v3541_v18  ;;  %v3543_v19 = vpop.f32.mrb[2].mxu0 }
 0xefe   : > { %v3544_v20 = vpop.f32.mrb[3].mxu0 }
 0xeff PF: > { %s6384_s19 = sld [smem:[#allocation35_spill]]  ;;  %s6385_s7 = sld [smem:[#allocation57_spill]] }
 0xf00   : > { %s3563_s17 = sshll.u32 %s5903_s12, 4  ;;  %s3549_s26 = scalar_lea.sflag [#allocation5], %s935_s4  ;;  %s3564_s17 = int_to_ptr.vmem [resolvable:$true] %s3563_s17 }
 0xf01   : > { %s5070_s18 = scalar_lea.vmem %s3564_s17, 256  ;;  %p6386_p9 = scmp.ne.s32.totalorder %s6345_s20, 0 }
 0xf02   : > { %p5071_p3 = scmp.ne.s32.totalorder %s3564_s17, %s5070_s18  ;;  %s5246_s11 = smov [#allocation23]  }
 0xf03   : > { %s5074_s1 = sshll.u32 %s5246_s11, 4  ;;  %s5075_s1 = int_to_ptr.vmem [resolvable:$false] %s5074_s1 }
 0xf04   : > { %p5072_p13 = pnand %p5071_p3, %p6386_p9  ;;  %s5076_s6 = scalar_lea.vmem %s5075_s1, 512 }
 0xf05   : > { %s4065_s24 = sshll.u32 %s6384_s19, 8  ;;  %p5077_p7 = scmp.lt.s32.totalorder %s3564_s17, %s5075_s1 }
 0xf06   : > { %s6198_s16 = scalar_lea.hbm %s6385_s7, %s4065_s24  ;;  %p5073_p4 = pneg %p5072_p13 }
 0xf07   : > { %p5078_p11 = scmp.lt.s32.totalorder %s5076_s6, %s5070_s18 }
 0xf09   : > { %p5079_p8 = por %p5078_p11, %p5077_p7 }
 0xf0b   : > { %p5080_p2 = pnand %p5079_p8, %p5073_p4 }
 0xf0d   : > { %5083 = shalt.err (!%p5080_p2)
}
 0xf0e   : > { %s5084_s12 = scalar_lea.hbm %s6198_s16, 256  ;;  %s5088_s10 = scalar_lea.hbm %s6385_s7, 512 }
 0xf0f   : > { %p5085_p6 = scmp.ne.s32.totalorder %s6198_s16, %s5084_s12  ;;  %p5089_p5 = scmp.lt.u32.totalorder %s6198_s16, %s6385_s7 }
 0xf10   : > { %p5090_p1 = scmp.lt.u32.totalorder %s5088_s10, %s5084_s12  ;;  %p5092_p3 = scmp.lt.u32.totalorder %s5084_s12, %s6198_s16 }
 0xf11   : > { %p5086_p10 = pnand %p5085_p6, %p6386_p9 }
 0xf12   : > { %p5091_p0 = por %p5090_p1, %p5089_p5 }
 0xf13   : > { %p5087_p12 = pneg %p5086_p10 }
 0xf14   : > { %p5093_p13 = por %p5092_p3, %p5091_p0 }
 0xf16   : > { %p5094_p4 = pnand %p5093_p13, %p5087_p12 }
 0xf18   : > { %5097 = shalt.err (!%p5094_p4)
}
 0xf19   : > { %4340 = dma.vmem_to_hbm [thread:$0]  (%p6386_p9), %s3564_s17, 256, %s6198_s16, %s3549_s26  }
 0xf1a PF: > { %p4387_p7 = scmp.ge.s32.totalorder %s5216_s0, 2  ;;  %s3575_s30 = sand.u32 1, %s5176_s21  }
 0xf1b   : > { %p6387_p11 = scmp.ne.s32.totalorder %s6346_s28, 0  ;;  %s3576_s9 = scalar_lea.sflag [#allocation5], %s3575_s30 }
 0xf1d   : > { %p4381_p8 = pnand %p4387_p7, %p6387_p11 }
 0xf1f   : > { %5171 = dma.done.wait (!%p4381_p8), %s3576_s9, 256  }
 0xf20   : > { %5173 = vsyncadd (!%p4381_p8), %s3576_s9, 4294967040  ;;  %s48_s0 = sadd.s32 1, %s5216_s0   ;;  %s6388_s23 = sld [smem:[#allocation32_spill]] }
 0xf21   : > { %p45_p2 = scmp.ge.s32.totalorder %s48_s0, 6   ;;  %s6389_s19 = sld [smem:[#allocation40_spill]] }
 0xf22   : > { %s6390_s20 = sld [smem:[#allocation33_spill]]  ;;  %s6391_s26 = sld [smem:[#allocation39_spill]] }
 0xf23   : > { %s6392_s28 = sld [smem:[#allocation36_spill]]  ;;  %s6393_s3 = sld [smem:[#allocation37_spill]] }
 0xf24   : > { %s6394_s30 = sld [smem:[#allocation38_spill]]  ;;  %s6395_s21 = smov %s5180_s22 }
 0xf25   : > { %s6398_s24 = smov %s5192_s25  ;;  %s6400_s27 = smov %s5208_s29 }
 0xf26   : > { %s6396_s22 = smov %s6388_s23  ;;  %47 = sbr.rel (!%p45_p2) target bundleno = 38 (0x26), region = 268 }
 0xf27   : > { %s6397_s23 = smov %s6389_s19 }
 0xf28   : > { %s6399_s25 = smov %s6390_s20 }
 0xf29   : > { %s6401_s29 = smov %s6393_s3 }
 0xf2d   :  { %3581 = vsyncpa [#allocation4], 1 }
 0xf2e   :  { %3583 = vsyncpa [#allocation4 + $0x1], 1 }
 0xf2f   :  { %3584 = vsyncpa [#allocation7], 1 }
 0xf30   :  { %3586 = vsyncpa [#allocation7 + $0x1], 1 }
 0xf31   :  { %3587 = vsyncpa [#allocation10], 1 }
 0xf32   :  { %3589 = vsyncpa [#allocation10 + $0x1], 1 }
 0xf33   :  { %3590 = vsyncpa [#allocation13], 1 }
 0xf34   :  { %3592 = vsyncpa [#allocation13 + $0x1], 1 }
 0xf35   :  { %3593 = vsyncpa [#allocation16], 1 }
 0xf36   :  { %3595 = vsyncpa [#allocation16 + $0x1], 1 }
 0xf37   :  { %3596 = vsyncpa [#allocation19], 1 }
 0xf38   :  { %3598 = vsyncpa [#allocation19 + $0x1], 1 }
 0xf39   :  { %3599 = vsyncpa [#allocation22], 1 }
 0xf3a   :  { %3601 = vsyncpa [#allocation22 + $0x1], 1 }
 0xf3b   :  { %3602 = vsyncpa [#allocation5], 1 }
 0xf3c   :  { %3604 = vsyncpa [#allocation5 + $0x1], 1 }

</bundles_post_ra>
